<compile_context>
chip_gen: v7x
topology: tpu7x:2x2x1
jax: 0.10.0
libtpu: 0.0.40
codegen_flags: <defaults>
</compile_context>

<pallas_src>
import functools
import numpy as np

import jax
import jax.numpy as jnp
from jax.experimental import pallas as pl
from jax.experimental.pallas import tpu as pltpu

LN_EPS = 1e-5  # PyTorch nn.LayerNorm default


# ----------------------------------------------------------------------------- helpers
def _layernorm(y, g, b):
    mean = jnp.mean(y, axis=-1, keepdims=True)
    var = jnp.mean((y - mean) ** 2, axis=-1, keepdims=True)
    return (y - mean) * jax.lax.rsqrt(var + LN_EPS) * g + b


def _shift_rows(x, off, row_ids):
    """y[t] = x[t + off], zero-padded outside [0, T).  XLU roll + iota mask (no concat of zeros)."""
    T = x.shape[0]
    if off == 0:
        return x
    rolled = pltpu.roll(x, shift=(-off) % T, axis=0)
    keep = (row_ids < T - off) if off > 0 else (row_ids >= -off)
    return jnp.where(keep, rolled, 0.0)


def _conv1d_k3(x, w_stacked, bias, row_ids):
    """Conv1d(kernel=3, padding=1) over the time axis of a (T, C) slab as ONE matmul.
    w_stacked is (3*C, C_out) bf16 with row blocks ordered [x(t-1) | x(t) | x(t+1)]."""
    lhs = jnp.concatenate(
        [_shift_rows(x, -1, row_ids), x, _shift_rows(x, +1, row_ids)], axis=-1
    ).astype(jnp.bfloat16)
    return jnp.dot(lhs, w_stacked, preferred_element_type=jnp.float32) + bias


# ----------------------------------------------------------------------------- fused stage kernel
def _stage_kernel(len_ref,                                     # scalar prefetch: (B,) int32 in SMEM
                  x_ref, pe_ref,
                  wq_ref, bq_ref, wk_ref, bk_ref, wv_ref, bv_ref, wo_ref, bo_ref,
                  g1_ref, beta1_ref,
                  w1_ref, cb1_ref, w2_ref, cb2_ref, g2_ref, beta2_ref,
                  o_ref,
                  h_ref,                                       # VMEM scratch (T, D) f32 carry
                  *, n_head, d_k, d_v):
    """One FFTBlock layer per grid step; grid = (batch, layer).  Activation stays in
    the h_ref scratch across layers; per-layer weights stream through VMEM."""
    T, D = h_ref.shape
    b = pl.program_id(0)
    l = pl.program_id(1)
    n_layers = pl.num_programs(1)
    length = len_ref[b]

    # masks built in-kernel from the prefetched length (no HBM mask tensors)
    row_ids = jax.lax.broadcasted_iota(jnp.int32, (T, 1), 0)
    valid_q = row_ids < length                                  # (T, 1) bool
    nonpad = valid_q.astype(jnp.float32)                        # (T, 1)
    key_valid = jax.lax.broadcasted_iota(jnp.int32, (1, T), 1) < length   # (1, T)
    neg_big = jnp.float32(-1e30)

    # layer 0: seed the carry with input + sinusoidal PE (padded positions get PE == 0)
    @pl.when(l == 0)
    def _():
        h_ref[...] = x_ref[0] + jnp.where(valid_q, pe_ref[...], 0.0)

    h = h_ref[...]                                              # (T, D) f32
    hb = h.astype(jnp.bfloat16)

    # ---------------- multi-head self-attention --------------------------------------
    # merged-head projections: one lane-wide (T, D) @ (D, H*dk) matmul each.
    # 1/sqrt(d_k) is already folded into wq / bq.
    q = jnp.dot(hb, wq_ref[0], preferred_element_type=jnp.float32) + bq_ref[0]   # (T, H*dk)
    k = jnp.dot(hb, wk_ref[0], preferred_element_type=jnp.float32) + bk_ref[0]   # (T, H*dk)
    v = jnp.dot(hb, wv_ref[0], preferred_element_type=jnp.float32) + bv_ref[0]   # (T, H*dv)

    # per-head scores / softmax / context on lane slices of the merged projections
    # (the per-head matmuls are inherent; only the projections needed merging).
    ctx_parts = []
    for hh in range(n_head):
        qs = q[:, hh * d_k:(hh + 1) * d_k].astype(jnp.bfloat16)     # (T, dk)
        ks = k[:, hh * d_k:(hh + 1) * d_k].astype(jnp.bfloat16)     # (T, dk)
        vs = v[:, hh * d_v:(hh + 1) * d_v].astype(jnp.bfloat16)     # (T, dv)
        s = jnp.einsum('qd,kd->qk', qs, ks,
                       preferred_element_type=jnp.float32)          # (T, T) f32
        s = jnp.where(key_valid, s, neg_big)           # masked_fill(-inf) on padded keys
        s = s - jnp.max(s, axis=-1, keepdims=True)
        p = jnp.exp(s)
        # NOTE: approx reciprocal (EUP) -- use exact division for bit-tight torch parity.
        p = p * pl.reciprocal(jnp.sum(p, axis=-1, keepdims=True), approx=True)
        ctx_parts.append(jnp.dot(p.astype(jnp.bfloat16), vs,
                                 preferred_element_type=jnp.float32))  # (T, dv)

    # fused output projection + head reduction: (T, H*dv) @ (H*dv, D) in one dot
    ctx_flat = jnp.concatenate(ctx_parts, axis=-1).astype(jnp.bfloat16)
    attn_out = jnp.dot(ctx_flat, wo_ref[0],
                       preferred_element_type=jnp.float32) + bo_ref[0]            # (T, D)
    h = _layernorm(attn_out + h, g1_ref[0], beta1_ref[0]) * nonpad   # residual + post-LN + mask

    # ---------------- position-wise FFN: Conv1d(3) -> ReLU -> Conv1d(3) ---------------
    x_in = h
    h1 = jnp.maximum(_conv1d_k3(x_in, w1_ref[0], cb1_ref[0], row_ids), 0.0)
    y = _conv1d_k3(h1, w2_ref[0], cb2_ref[0], row_ids)
    h = _layernorm(y + x_in, g2_ref[0], beta2_ref[0]) * nonpad

    h_ref[...] = h

    @pl.when(l == n_layers - 1)
    def _():
        o_ref[0] = h


# ----------------------------------------------------------------------------- wrapper
def _vmem_limit_bytes(T, D, H, d_k, d_v, d_inner):
    """Rough per-core VMEM need: double-buffered single-layer weights + activation
    blocks + in-kernel intermediates, with 2x headroom; capped below v7x's 64 MiB."""
    bf16, f32 = 2, 4
    w_layer = bf16 * (2 * D * H * d_k + D * H * d_v + H * d_v * D
                      + 3 * D * d_inner + 3 * d_inner * D) \
              + f32 * (2 * H * d_k + H * d_v + 6 * D + d_inner)
    blocks = f32 * T * D * 7                       # x(2-buf) + out(2-buf) + pe(2-buf) + carry
    interm = f32 * (T * T + T * (2 * H * d_k + 2 * H * d_v)
                    + 2 * T * 3 * max(D, d_inner) + 8 * T * D)
    est = 2 * w_layer + blocks + interm
    return int(min(56 * 2 ** 20, max(32 * 2 ** 20, 2 * est)))


def run_fft_stage(feat, feat_length, p, pe, *, n_head, d_k, d_v):
    """All n_layers FFTBlocks of one downsample stage in a single pallas_call."""
    B, T, D = feat.shape
    n_layers = p['wq'].shape[0]
    d_inner = p['cb1'].shape[-1]
    names = ['wq', 'bq', 'wk', 'bk', 'wv', 'bv', 'wo', 'bo',
             'ln1_g', 'ln1_b', 'w1', 'cb1', 'w2', 'cb2', 'ln2_g', 'ln2_b']
    weights = [p[n] for n in names]

    def layer_spec(a):
        """Stream one layer's slice of a stacked (L, X, Y) parameter per grid step."""
        nt = a.ndim - 1
        return pl.BlockSpec((1,) + a.shape[1:],
                            lambda b, l, L, nt=nt: (l,) + (0,) * nt)

    kernel = functools.partial(_stage_kernel, n_head=n_head, d_k=d_k, d_v=d_v)

    grid_spec = pltpu.PrefetchScalarGridSpec(
        num_scalar_prefetch=1,                                   # feat_length -> SMEM
        grid=(B, n_layers),                                      # batch x layer
        in_specs=[pl.BlockSpec((1, T, D), lambda b, l, L: (b, 0, 0)),   # activations
                  pl.BlockSpec((T, D), lambda b, l, L: (0, 0))]         # positional encodings
                 + [layer_spec(a) for a in weights],
        out_specs=pl.BlockSpec((1, T, D), lambda b, l, L: (b, 0, 0)),   # revisited across layers
        scratch_shapes=[pltpu.VMEM((T, D), jnp.float32)],               # activation carry
    )
    return pl.pallas_call(
        kernel,
        out_shape=jax.ShapeDtypeStruct((B, T, D), jnp.float32),
        grid_spec=grid_spec,
        compiler_params=pltpu.CompilerParams(
            dimension_semantics=("parallel", "arbitrary"),
            vmem_limit_bytes=_vmem_limit_bytes(T, D, n_head, d_k, d_v, d_inner)),
    )(feat_length, feat, pe, *weights)


# ----------------------------------------------------------------------------- weight prep
def init_stage_params(key, n_layers, D, H, d_k, d_v, d_inner):
    """'Logical' (torch-equivalent, per-head) parameters for one FFTBlocks stage."""
    ks = jax.random.split(key, 6)
    nrm = lambda k, shp: 0.02 * jax.random.normal(k, shp, jnp.float32)
    z = lambda shp: jnp.zeros(shp, jnp.float32)
    return dict(
        wq=nrm(ks[0], (n_layers, H, D, d_k)), bq=z((n_layers, H, d_k)),
        wk=nrm(ks[1], (n_layers, H, D, d_k)), bk=z((n_layers, H, d_k)),
        wv=nrm(ks[2], (n_layers, H, D, d_v)), bv=z((n_layers, H, d_v)),
        wo=nrm(ks[3], (n_layers, H, d_v, D)), bo=z((n_layers, D)),
        ln1_g=jnp.ones((n_layers, D), jnp.float32), ln1_b=z((n_layers, D)),
        # conv taps: index 0 -> x[t-1], 1 -> x[t], 2 -> x[t+1]
        # TODO(synk): torch Conv1d weights are (out, in, k); permute(2, 1, 0) when importing.
        w1=nrm(ks[4], (n_layers, 3, D, d_inner)), cb1=z((n_layers, d_inner)),
        w2=nrm(ks[5], (n_layers, 3, d_inner, D)), cb2=z((n_layers, D)),
        ln2_g=jnp.ones((n_layers, D), jnp.float32), ln2_b=z((n_layers, D)))


def prepare_stage_params(raw, d_k_dim):
    """Rearrange per-head params into the fused kernel layout:
       heads merged into lane-wide projections, 1/sqrt(d_k) folded into wq/bq,
       conv taps stacked along the contraction axis, matmul weights cast to bf16
       (biases / LayerNorm params stay f32)."""
    L, H, D, dk = raw['wq'].shape
    dv = raw['wv'].shape[-1]
    d_inner = raw['w1'].shape[-1]
    scale = jnp.float32(1.0 / (d_k_dim ** 0.5))
    merge_w = lambda w: jnp.transpose(w, (0, 2, 1, 3)).reshape(L, D, -1)   # (L,H,D,c)->(L,D,H*c)
    merge_b = lambda b: b.reshape(L, 1, -1)                                 # (L,H,c)->(L,1,H*c)
    return dict(
        wq=(merge_w(raw['wq']) * scale).astype(jnp.bfloat16),
        bq=merge_b(raw['bq']) * scale,
        wk=merge_w(raw['wk']).astype(jnp.bfloat16), bk=merge_b(raw['bk']),
        wv=merge_w(raw['wv']).astype(jnp.bfloat16), bv=merge_b(raw['bv']),
        wo=raw['wo'].reshape(L, H * dv, D).astype(jnp.bfloat16),
        bo=raw['bo'].reshape(L, 1, D),
        ln1_g=raw['ln1_g'].reshape(L, 1, D), ln1_b=raw['ln1_b'].reshape(L, 1, D),
        w1=raw['w1'].reshape(L, 3 * D, d_inner).astype(jnp.bfloat16),
        cb1=raw['cb1'].reshape(L, 1, d_inner),
        w2=raw['w2'].reshape(L, 3 * d_inner, D).astype(jnp.bfloat16),
        cb2=raw['cb2'].reshape(L, 1, D),
        ln2_g=raw['ln2_g'].reshape(L, 1, D), ln2_b=raw['ln2_b'].reshape(L, 1, D))


# ----------------------------------------------------------------------------- glue (outside kernels)
def avg_pool1d_ceil(x, scale):
    """F.avg_pool1d(x.transpose(1,2), k=scale, s=scale, ceil_mode=True).transpose(1,2)."""
    B, T, D = x.shape
    T_out = -(-T // scale)
    pad = T_out * scale - T
    xp = jnp.pad(x, ((0, 0), (0, pad), (0, 0)))
    sums = xp.reshape(B, T_out, scale, D).sum(axis=2)
    counts = jnp.minimum(scale, T - jnp.arange(T_out) * scale).astype(jnp.float32)
    return sums / counts[None, :, None]


def sinusoid_pe(T, d_hid):
    """Sinusoid table rows for positions 1..T (the all-zero pos-0 row is handled in-kernel)."""
    pos = np.arange(1, T + 1)[:, None].astype(np.float64)
    i = np.arange(d_hid)[None, :]
    angle = pos / np.power(10000.0, 2 * (i // 2) / d_hid)
    tab = np.zeros((T, d_hid), np.float64)
    tab[:, 0::2] = np.sin(angle[:, 0::2])
    tab[:, 1::2] = np.cos(angle[:, 1::2])
    return jnp.asarray(tab, dtype=jnp.float32)


def multi_stage_encoder(feat, feat_length, encoders, scales, *, n_head, d_k, d_v):
    """Mirrors MultiStageEncoder.forward: returns list of (feat, feat_length)."""
    outputs = []
    for params, scale in zip(encoders, scales):
        if scale > 1:
            feat = avg_pool1d_ceil(feat, scale)
            feat_length = jnp.ceil(feat_length.astype(jnp.float32) / scale).astype(jnp.int32)
        _, T, D = feat.shape
        pe = sinusoid_pe(T, D)
        feat = run_fft_stage(feat, feat_length, params, pe,
                             n_head=n_head, d_k=d_k, d_v=d_v)
        outputs.append((feat, feat_length))
    return outputs


# ----------------------------------------------------------------------------- main
if __name__ == "__main__":
    B, T, C = 2, 16, 32                 # in_channels = d_model = 32
    N_LAYERS, N_HEAD, D_K, D_V, D_INNER = 2, 2, 16, 16, 64
    SCALES = [1, 2]                     # downsample_scales

    key = jax.random.PRNGKey(0)
    kx, kp = jax.random.split(key)
    x = jax.random.normal(kx, (B, T, C), jnp.float32)
    lengths = jnp.array([T, 11], jnp.int32)

    stage_keys = jax.random.split(kp, len(SCALES))
    encoders = [prepare_stage_params(
                    init_stage_params(k, N_LAYERS, C, N_HEAD, D_K, D_V, D_INNER), D_K)
                for k in stage_keys]

    outs = multi_stage_encoder(x, lengths, encoders, SCALES,
                               n_head=N_HEAD, d_k=D_K, d_v=D_V)
    for feat, fl in outs:
        jax.block_until_ready(feat)
        assert bool(jnp.all(jnp.isfinite(feat)))
    print("KERNEL_OK")
</pallas_src>

<mosaic_0001>
module attributes {stable_mosaic.version = 11 : i64} {
  func.func @_stage_kernel(%arg0: i32, %arg1: i32, %arg2: memref<2xi32, #tpu.memory_space<smem>>, %arg3: memref<1x16x32xf32, #tpu.memory_space<vmem>>, %arg4: memref<16x32xf32, #tpu.memory_space<vmem>>, %arg5: memref<1x32x32xbf16, #tpu.memory_space<vmem>>, %arg6: memref<1x1x32xf32, #tpu.memory_space<vmem>>, %arg7: memref<1x32x32xbf16, #tpu.memory_space<vmem>>, %arg8: memref<1x1x32xf32, #tpu.memory_space<vmem>>, %arg9: memref<1x32x32xbf16, #tpu.memory_space<vmem>>, %arg10: memref<1x1x32xf32, #tpu.memory_space<vmem>>, %arg11: memref<1x32x32xbf16, #tpu.memory_space<vmem>>, %arg12: memref<1x1x32xf32, #tpu.memory_space<vmem>>, %arg13: memref<1x1x32xf32, #tpu.memory_space<vmem>>, %arg14: memref<1x1x32xf32, #tpu.memory_space<vmem>>, %arg15: memref<1x96x64xbf16, #tpu.memory_space<vmem>>, %arg16: memref<1x1x64xf32, #tpu.memory_space<vmem>>, %arg17: memref<1x192x32xbf16, #tpu.memory_space<vmem>>, %arg18: memref<1x1x32xf32, #tpu.memory_space<vmem>>, %arg19: memref<1x1x32xf32, #tpu.memory_space<vmem>>, %arg20: memref<1x1x32xf32, #tpu.memory_space<vmem>>, %arg21: memref<1x16x32xf32, #tpu.memory_space<vmem>>, %arg22: memref<16x32xf32, #tpu.memory_space<vmem>>) attributes {dimension_semantics = [#tpu.dimension_semantics<parallel>, #tpu.dimension_semantics<arbitrary>], iteration_bounds = array<i64: 2, 2>, scalar_prefetch = 1 : i64, scratch_operands = 1 : i64, tpu.core_type = #tpu.core_type<tc>, window_params = [{transform_indices = @transform_0, window_bounds = array<i64: 1, 16, 32>}, {pipeline_mode = #tpu.pipeline_mode<synchronous>, transform_indices = @transform_1, window_bounds = array<i64: 16, 32>}, {transform_indices = @transform_2, window_bounds = array<i64: 1, 32, 32>}, {transform_indices = @transform_3, window_bounds = array<i64: 1, 1, 32>}, {transform_indices = @transform_4, window_bounds = array<i64: 1, 32, 32>}, {transform_indices = @transform_5, window_bounds = array<i64: 1, 1, 32>}, {transform_indices = @transform_6, window_bounds = array<i64: 1, 32, 32>}, {transform_indices = @transform_7, window_bounds = array<i64: 1, 1, 32>}, {transform_indices = @transform_8, window_bounds = array<i64: 1, 32, 32>}, {transform_indices = @transform_9, window_bounds = array<i64: 1, 1, 32>}, {transform_indices = @transform_10, window_bounds = array<i64: 1, 1, 32>}, {transform_indices = @transform_11, window_bounds = array<i64: 1, 1, 32>}, {transform_indices = @transform_12, window_bounds = array<i64: 1, 96, 64>}, {transform_indices = @transform_13, window_bounds = array<i64: 1, 1, 64>}, {transform_indices = @transform_14, window_bounds = array<i64: 1, 192, 32>}, {transform_indices = @transform_15, window_bounds = array<i64: 1, 1, 32>}, {transform_indices = @transform_16, window_bounds = array<i64: 1, 1, 32>}, {transform_indices = @transform_17, window_bounds = array<i64: 1, 1, 32>}, {transform_indices = @transform_18, window_bounds = array<i64: 1, 16, 32>}]} {
    %0 = arith.index_cast %arg0 : i32 to index
    %1 = memref.load %arg2[%0] : memref<2xi32, #tpu.memory_space<smem>>
    %2 = tpu.iota {dimensions = array<i32: 0>} : vector<16x1xi32>
    %3 = vector.broadcast %1 : i32 to vector<16x1xi32>
    %4 = arith.cmpi slt, %2, %3 : vector<16x1xi32>
    %5 = arith.extui %4 : vector<16x1xi1> to vector<16x1xi32>
    %6 = arith.sitofp %5 : vector<16x1xi32> to vector<16x1xf32>
    %7 = tpu.iota {dimensions = array<i32: 1>} : vector<1x16xi32>
    %8 = vector.broadcast %1 : i32 to vector<1x16xi32>
    %9 = arith.cmpi slt, %7, %8 : vector<1x16xi32>
    %c0_i32 = arith.constant 0 : i32
    %10 = arith.cmpi eq, %arg1, %c0_i32 : i32
    %11 = arith.extui %10 : i1 to i32
    %c0_i32_0 = arith.constant 0 : i32
    %12 = arith.cmpi ne, %11, %c0_i32_0 : i32
    scf.if %12 {
      %c0_90 = arith.constant 0 : index
      %c0_91 = arith.constant 0 : index
      %c0_92 = arith.constant 0 : index
      %201 = vector.load %arg3[%c0_90, %c0_91, %c0_92] : memref<1x16x32xf32, #tpu.memory_space<vmem>>, vector<1x16x32xf32>
      %202 = vector.shape_cast %201 : vector<1x16x32xf32> to vector<16x32xf32>
      %c0_93 = arith.constant 0 : index
      %c0_94 = arith.constant 0 : index
      %203 = vector.load %arg4[%c0_93, %c0_94] : memref<16x32xf32, #tpu.memory_space<vmem>>, vector<16x32xf32>
      %cst_95 = arith.constant 0.000000e+00 : f32
      %204 = vector.shape_cast %4 : vector<16x1xi1> to vector<16x1xi1>
      %205 = vector.broadcast %204 : vector<16x1xi1> to vector<16x32xi1>
      %206 = vector.broadcast %cst_95 : f32 to vector<16x32xf32>
      %207 = arith.select %205, %203, %206 : vector<16x32xi1>, vector<16x32xf32>
      %208 = arith.addf %202, %207 : vector<16x32xf32>
      %c0_96 = arith.constant 0 : index
      %c0_97 = arith.constant 0 : index
      %209 = vector.load %arg22[%c0_96, %c0_97] : memref<16x32xf32, #tpu.memory_space<vmem>>, vector<16x32xf32>
      tpu.vector_store %arg22[%c0_96, %c0_97], %208 {strides = array<i32>} : memref<16x32xf32, #tpu.memory_space<vmem>>, vector<16x32xf32>,
    } else {
    }
    %c0 = arith.constant 0 : index
    %c0_1 = arith.constant 0 : index
    %13 = vector.load %arg22[%c0, %c0_1] : memref<16x32xf32, #tpu.memory_space<vmem>>, vector<16x32xf32>
    %14 = arith.truncf %13 : vector<16x32xf32> to vector<16x32xbf16>
    %c0_2 = arith.constant 0 : index
    %c0_3 = arith.constant 0 : index
    %c0_4 = arith.constant 0 : index
    %15 = vector.load %arg5[%c0_2, %c0_3, %c0_4] : memref<1x32x32xbf16, #tpu.memory_space<vmem>>, vector<1x32x32xbf16>
    %16 = vector.shape_cast %15 : vector<1x32x32xbf16> to vector<32x32xbf16>
    %cst = arith.constant dense<0.000000e+00> : vector<16x32xf32>
    %17 = tpu.matmul %14, %16, %cst {dimension_numbers = #tpu.dot_dimension_numbers<[1], [0], [0], [1], [0, 0, 1, 1], [], []>} : vector<16x32xbf16>, vector<32x32xbf16>, vector<16x32xf32> -> vector<16x32xf32>
    %c0_5 = arith.constant 0 : index
    %c0_6 = arith.constant 0 : index
    %c0_7 = arith.constant 0 : index
    %18 = vector.load %arg6[%c0_5, %c0_6, %c0_7] : memref<1x1x32xf32, #tpu.memory_space<vmem>>, vector<1x1x32xf32>
    %19 = vector.shape_cast %18 : vector<1x1x32xf32> to vector<1x32xf32>
    %20 = vector.broadcast %19 : vector<1x32xf32> to vector<16x32xf32>
    %21 = arith.addf %17, %20 : vector<16x32xf32>
    %c0_8 = arith.constant 0 : index
    %c0_9 = arith.constant 0 : index
    %c0_10 = arith.constant 0 : index
    %22 = vector.load %arg7[%c0_8, %c0_9, %c0_10] : memref<1x32x32xbf16, #tpu.memory_space<vmem>>, vector<1x32x32xbf16>
    %23 = vector.shape_cast %22 : vector<1x32x32xbf16> to vector<32x32xbf16>
    %cst_11 = arith.constant dense<0.000000e+00> : vector<16x32xf32>
    %24 = tpu.matmul %14, %23, %cst_11 {dimension_numbers = #tpu.dot_dimension_numbers<[1], [0], [0], [1], [0, 0, 1, 1], [], []>} : vector<16x32xbf16>, vector<32x32xbf16>, vector<16x32xf32> -> vector<16x32xf32>
    %c0_12 = arith.constant 0 : index
    %c0_13 = arith.constant 0 : index
    %c0_14 = arith.constant 0 : index
    %25 = vector.load %arg8[%c0_12, %c0_13, %c0_14] : memref<1x1x32xf32, #tpu.memory_space<vmem>>, vector<1x1x32xf32>
    %26 = vector.shape_cast %25 : vector<1x1x32xf32> to vector<1x32xf32>
    %27 = vector.broadcast %26 : vector<1x32xf32> to vector<16x32xf32>
    %28 = arith.addf %24, %27 : vector<16x32xf32>
    %c0_15 = arith.constant 0 : index
    %c0_16 = arith.constant 0 : index
    %c0_17 = arith.constant 0 : index
    %29 = vector.load %arg9[%c0_15, %c0_16, %c0_17] : memref<1x32x32xbf16, #tpu.memory_space<vmem>>, vector<1x32x32xbf16>
    %30 = vector.shape_cast %29 : vector<1x32x32xbf16> to vector<32x32xbf16>
    %cst_18 = arith.constant dense<0.000000e+00> : vector<16x32xf32>
    %31 = tpu.matmul %14, %30, %cst_18 {dimension_numbers = #tpu.dot_dimension_numbers<[1], [0], [0], [1], [0, 0, 1, 1], [], []>} : vector<16x32xbf16>, vector<32x32xbf16>, vector<16x32xf32> -> vector<16x32xf32>
    %c0_19 = arith.constant 0 : index
    %c0_20 = arith.constant 0 : index
    %c0_21 = arith.constant 0 : index
    %32 = vector.load %arg10[%c0_19, %c0_20, %c0_21] : memref<1x1x32xf32, #tpu.memory_space<vmem>>, vector<1x1x32xf32>
    %33 = vector.shape_cast %32 : vector<1x1x32xf32> to vector<1x32xf32>
    %34 = vector.broadcast %33 : vector<1x32xf32> to vector<16x32xf32>
    %35 = arith.addf %31, %34 : vector<16x32xf32>
    %36 = vector.extract_strided_slice %21 {offsets = [0, 0], sizes = [16, 16], strides = [1, 1]} : vector<16x32xf32> to vector<16x16xf32>
    %37 = arith.truncf %36 : vector<16x16xf32> to vector<16x16xbf16>
    %38 = vector.extract_strided_slice %28 {offsets = [0, 0], sizes = [16, 16], strides = [1, 1]} : vector<16x32xf32> to vector<16x16xf32>
    %39 = arith.truncf %38 : vector<16x16xf32> to vector<16x16xbf16>
    %40 = vector.extract_strided_slice %35 {offsets = [0, 0], sizes = [16, 16], strides = [1, 1]} : vector<16x32xf32> to vector<16x16xf32>
    %41 = arith.truncf %40 : vector<16x16xf32> to vector<16x16xbf16>
    "tpu.trace_start"() <{level = 10 : i32, message = "qd,kd->qk"}> : () -> ()
    %cst_22 = arith.constant dense<0.000000e+00> : vector<16x16xf32>
    %42 = tpu.matmul %37, %39, %cst_22 {dimension_numbers = #tpu.dot_dimension_numbers<[1], [1], [0], [0], [0, 0, 1, 0], [], []>} : vector<16x16xbf16>, vector<16x16xbf16>, vector<16x16xf32> -> vector<16x16xf32>
    %cst_23 = arith.constant -1.000000e+30 : f32
    "tpu.trace_stop"() : () -> ()
    %43 = vector.shape_cast %9 : vector<1x16xi1> to vector<1x16xi1>
    %44 = vector.broadcast %43 : vector<1x16xi1> to vector<16x16xi1>
    %45 = vector.broadcast %cst_23 : f32 to vector<16x16xf32>
    %46 = arith.select %44, %42, %45 : vector<16x16xi1>, vector<16x16xf32>
    %cst_24 = arith.constant dense<0xFF800000> : vector<16xf32>
    %47 = vector.multi_reduction <maximumf>, %46, %cst_24 [1] : vector<16x16xf32> to vector<16xf32>
    %48 = vector.shape_cast %47 : vector<16xf32> to vector<16x1xf32>
    %49 = vector.broadcast %48 : vector<16x1xf32> to vector<16x16xf32>
    %50 = arith.subf %46, %49 : vector<16x16xf32>
    %51 = math.exp %50 : vector<16x16xf32>
    %cst_25 = arith.constant dense<0.000000e+00> : vector<16xf32>
    %52 = vector.multi_reduction <add>, %51, %cst_25 [1] : vector<16x16xf32> to vector<16xf32>
    %53 = vector.shape_cast %52 : vector<16xf32> to vector<16x1xf32>
    %54 = tpu.reciprocal %53 {approx = true} : vector<16x1xf32> -> vector<16x1xf32>
    %55 = vector.broadcast %54 : vector<16x1xf32> to vector<16x16xf32>
    %56 = arith.mulf %51, %55 : vector<16x16xf32>
    %57 = arith.truncf %56 : vector<16x16xf32> to vector<16x16xbf16>
    %cst_26 = arith.constant dense<0.000000e+00> : vector<16x16xf32>
    %58 = tpu.matmul %57, %41, %cst_26 {dimension_numbers = #tpu.dot_dimension_numbers<[1], [0], [0], [1], [0, 0, 1, 1], [], []>} : vector<16x16xbf16>, vector<16x16xbf16>, vector<16x16xf32> -> vector<16x16xf32>
    %59 = vector.extract_strided_slice %21 {offsets = [0, 16], sizes = [16, 16], strides = [1, 1]} : vector<16x32xf32> to vector<16x16xf32>
    %60 = arith.truncf %59 : vector<16x16xf32> to vector<16x16xbf16>
    %61 = vector.extract_strided_slice %28 {offsets = [0, 16], sizes = [16, 16], strides = [1, 1]} : vector<16x32xf32> to vector<16x16xf32>
    %62 = arith.truncf %61 : vector<16x16xf32> to vector<16x16xbf16>
    %63 = vector.extract_strided_slice %35 {offsets = [0, 16], sizes = [16, 16], strides = [1, 1]} : vector<16x32xf32> to vector<16x16xf32>
    %64 = arith.truncf %63 : vector<16x16xf32> to vector<16x16xbf16>
    "tpu.trace_start"() <{level = 10 : i32, message = "qd,kd->qk"}> : () -> ()
    %cst_27 = arith.constant dense<0.000000e+00> : vector<16x16xf32>
    %65 = tpu.matmul %60, %62, %cst_27 {dimension_numbers = #tpu.dot_dimension_numbers<[1], [1], [0], [0], [0, 0, 1, 0], [], []>} : vector<16x16xbf16>, vector<16x16xbf16>, vector<16x16xf32> -> vector<16x16xf32>
    %cst_28 = arith.constant -1.000000e+30 : f32
    "tpu.trace_stop"() : () -> ()
    %66 = vector.shape_cast %9 : vector<1x16xi1> to vector<1x16xi1>
    %67 = vector.broadcast %66 : vector<1x16xi1> to vector<16x16xi1>
    %68 = vector.broadcast %cst_28 : f32 to vector<16x16xf32>
    %69 = arith.select %67, %65, %68 : vector<16x16xi1>, vector<16x16xf32>
    %cst_29 = arith.constant dense<0xFF800000> : vector<16xf32>
    %70 = vector.multi_reduction <maximumf>, %69, %cst_29 [1] : vector<16x16xf32> to vector<16xf32>
    %71 = vector.shape_cast %70 : vector<16xf32> to vector<16x1xf32>
    %72 = vector.broadcast %71 : vector<16x1xf32> to vector<16x16xf32>
    %73 = arith.subf %69, %72 : vector<16x16xf32>
    %74 = math.exp %73 : vector<16x16xf32>
    %cst_30 = arith.constant dense<0.000000e+00> : vector<16xf32>
    %75 = vector.multi_reduction <add>, %74, %cst_30 [1] : vector<16x16xf32> to vector<16xf32>
    %76 = vector.shape_cast %75 : vector<16xf32> to vector<16x1xf32>
    %77 = tpu.reciprocal %76 {approx = true} : vector<16x1xf32> -> vector<16x1xf32>
    %78 = vector.broadcast %77 : vector<16x1xf32> to vector<16x16xf32>
    %79 = arith.mulf %74, %78 : vector<16x16xf32>
    %80 = arith.truncf %79 : vector<16x16xf32> to vector<16x16xbf16>
    %cst_31 = arith.constant dense<0.000000e+00> : vector<16x16xf32>
    %81 = tpu.matmul %80, %64, %cst_31 {dimension_numbers = #tpu.dot_dimension_numbers<[1], [0], [0], [1], [0, 0, 1, 1], [], []>} : vector<16x16xbf16>, vector<16x16xbf16>, vector<16x16xf32> -> vector<16x16xf32>
    %82 = tpu.concatenate %58, %81 in 1 : vector<16x16xf32>, vector<16x16xf32> -> vector<16x32xf32>
    %83 = arith.truncf %82 : vector<16x32xf32> to vector<16x32xbf16>
    %c0_32 = arith.constant 0 : index
    %c0_33 = arith.constant 0 : index
    %c0_34 = arith.constant 0 : index
    %84 = vector.load %arg11[%c0_32, %c0_33, %c0_34] : memref<1x32x32xbf16, #tpu.memory_space<vmem>>, vector<1x32x32xbf16>
    %85 = vector.shape_cast %84 : vector<1x32x32xbf16> to vector<32x32xbf16>
    %cst_35 = arith.constant dense<0.000000e+00> : vector<16x32xf32>
    %86 = tpu.matmul %83, %85, %cst_35 {dimension_numbers = #tpu.dot_dimension_numbers<[1], [0], [0], [1], [0, 0, 1, 1], [], []>} : vector<16x32xbf16>, vector<32x32xbf16>, vector<16x32xf32> -> vector<16x32xf32>
    %c0_36 = arith.constant 0 : index
    %c0_37 = arith.constant 0 : index
    %c0_38 = arith.constant 0 : index
    %87 = vector.load %arg12[%c0_36, %c0_37, %c0_38] : memref<1x1x32xf32, #tpu.memory_space<vmem>>, vector<1x1x32xf32>
    %88 = vector.shape_cast %87 : vector<1x1x32xf32> to vector<1x32xf32>
    %89 = vector.broadcast %88 : vector<1x32xf32> to vector<16x32xf32>
    %90 = arith.addf %86, %89 : vector<16x32xf32>
    %91 = arith.addf %90, %13 : vector<16x32xf32>
    %c0_39 = arith.constant 0 : index
    %c0_40 = arith.constant 0 : index
    %c0_41 = arith.constant 0 : index
    %92 = vector.load %arg13[%c0_39, %c0_40, %c0_41] : memref<1x1x32xf32, #tpu.memory_space<vmem>>, vector<1x1x32xf32>
    %93 = vector.shape_cast %92 : vector<1x1x32xf32> to vector<1x32xf32>
    %c0_42 = arith.constant 0 : index
    %c0_43 = arith.constant 0 : index
    %c0_44 = arith.constant 0 : index
    %94 = vector.load %arg14[%c0_42, %c0_43, %c0_44] : memref<1x1x32xf32, #tpu.memory_space<vmem>>, vector<1x1x32xf32>
    %95 = vector.shape_cast %94 : vector<1x1x32xf32> to vector<1x32xf32>
    %cst_45 = arith.constant dense<0.000000e+00> : vector<16xf32>
    %96 = vector.multi_reduction <add>, %91, %cst_45 [1] : vector<16x32xf32> to vector<16xf32>
    %97 = vector.shape_cast %96 : vector<16xf32> to vector<16x1xf32>
    %cst_46 = arith.constant 3.200000e+01 : f32
    %98 = vector.broadcast %cst_46 : f32 to vector<16x1xf32>
    %99 = arith.divf %97, %98 : vector<16x1xf32>
    %100 = vector.broadcast %99 : vector<16x1xf32> to vector<16x32xf32>
    %101 = arith.subf %91, %100 : vector<16x32xf32>
    %102 = arith.mulf %101, %101 : vector<16x32xf32>
    %cst_47 = arith.constant dense<0.000000e+00> : vector<16xf32>
    %103 = vector.multi_reduction <add>, %102, %cst_47 [1] : vector<16x32xf32> to vector<16xf32>
    %104 = vector.shape_cast %103 : vector<16xf32> to vector<16x1xf32>
    %cst_48 = arith.constant 3.200000e+01 : f32
    %105 = vector.broadcast %cst_48 : f32 to vector<16x1xf32>
    %106 = arith.divf %104, %105 : vector<16x1xf32>
    %107 = vector.broadcast %99 : vector<16x1xf32> to vector<16x32xf32>
    %108 = arith.subf %91, %107 : vector<16x32xf32>
    %cst_49 = arith.constant 9.99999974E-6 : f32
    %109 = vector.broadcast %cst_49 : f32 to vector<16x1xf32>
    %110 = arith.addf %106, %109 : vector<16x1xf32>
    %111 = math.rsqrt %110 : vector<16x1xf32>
    %112 = vector.broadcast %111 : vector<16x1xf32> to vector<16x32xf32>
    %113 = arith.mulf %108, %112 : vector<16x32xf32>
    %114 = vector.broadcast %93 : vector<1x32xf32> to vector<16x32xf32>
    %115 = arith.mulf %113, %114 : vector<16x32xf32>
    %116 = vector.broadcast %95 : vector<1x32xf32> to vector<16x32xf32>
    %117 = arith.addf %115, %116 : vector<16x32xf32>
    %118 = vector.broadcast %6 : vector<16x1xf32> to vector<16x32xf32>
    %119 = arith.mulf %117, %118 : vector<16x32xf32>
    %c0_50 = arith.constant 0 : index
    %c0_51 = arith.constant 0 : index
    %c0_52 = arith.constant 0 : index
    %120 = vector.load %arg15[%c0_50, %c0_51, %c0_52] : memref<1x96x64xbf16, #tpu.memory_space<vmem>>, vector<1x96x64xbf16>
    %121 = vector.shape_cast %120 : vector<1x96x64xbf16> to vector<96x64xbf16>
    %c0_53 = arith.constant 0 : index
    %c0_54 = arith.constant 0 : index
    %c0_55 = arith.constant 0 : index
    %122 = vector.load %arg16[%c0_53, %c0_54, %c0_55] : memref<1x1x64xf32, #tpu.memory_space<vmem>>, vector<1x1x64xf32>
    %123 = vector.shape_cast %122 : vector<1x1x64xf32> to vector<1x64xf32>
    %c1_i32 = arith.constant 1 : i32
    %124 = tpu.dynamic_rotate %119 by %c1_i32 dim 0 : vector<16x32xf32>, i32 -> vector<16x32xf32>
    %c1_i32_56 = arith.constant 1 : i32
    %125 = vector.broadcast %c1_i32_56 : i32 to vector<16x1xi32>
    %126 = arith.cmpi sge, %2, %125 : vector<16x1xi32>
    %cst_57 = arith.constant 0.000000e+00 : f32
    %127 = vector.shape_cast %126 : vector<16x1xi1> to vector<16x1xi1>
    %128 = vector.broadcast %127 : vector<16x1xi1> to vector<16x32xi1>
    %129 = vector.broadcast %cst_57 : f32 to vector<16x32xf32>
    %130 = arith.select %128, %124, %129 : vector<16x32xi1>, vector<16x32xf32>
    %c15_i32 = arith.constant 15 : i32
    %131 = tpu.dynamic_rotate %119 by %c15_i32 dim 0 : vector<16x32xf32>, i32 -> vector<16x32xf32>
    %c15_i32_58 = arith.constant 15 : i32
    %132 = vector.broadcast %c15_i32_58 : i32 to vector<16x1xi32>
    %133 = arith.cmpi slt, %2, %132 : vector<16x1xi32>
    %cst_59 = arith.constant 0.000000e+00 : f32
    %134 = vector.shape_cast %133 : vector<16x1xi1> to vector<16x1xi1>
    %135 = vector.broadcast %134 : vector<16x1xi1> to vector<16x32xi1>
    %136 = vector.broadcast %cst_59 : f32 to vector<16x32xf32>
    %137 = arith.select %135, %131, %136 : vector<16x32xi1>, vector<16x32xf32>
    %138 = tpu.concatenate %130, %119, %137 in 1 : vector<16x32xf32>, vector<16x32xf32>, vector<16x32xf32> -> vector<16x96xf32>
    %139 = arith.truncf %138 : vector<16x96xf32> to vector<16x96xbf16>
    %cst_60 = arith.constant dense<0.000000e+00> : vector<16x64xf32>
    %140 = tpu.matmul %139, %121, %cst_60 {dimension_numbers = #tpu.dot_dimension_numbers<[1], [0], [0], [1], [0, 0, 1, 1], [], []>} : vector<16x96xbf16>, vector<96x64xbf16>, vector<16x64xf32> -> vector<16x64xf32>
    %141 = vector.broadcast %123 : vector<1x64xf32> to vector<16x64xf32>
    %142 = arith.addf %140, %141 : vector<16x64xf32>
    %cst_61 = arith.constant 0.000000e+00 : f32
    %143 = vector.broadcast %cst_61 : f32 to vector<16x64xf32>
    %144 = arith.maximumf %142, %143 : vector<16x64xf32>
    %c0_62 = arith.constant 0 : index
    %c0_63 = arith.constant 0 : index
    %c0_64 = arith.constant 0 : index
    %145 = vector.load %arg17[%c0_62, %c0_63, %c0_64] : memref<1x192x32xbf16, #tpu.memory_space<vmem>>, vector<1x192x32xbf16>
    %146 = vector.shape_cast %145 : vector<1x192x32xbf16> to vector<192x32xbf16>
    %c0_65 = arith.constant 0 : index
    %c0_66 = arith.constant 0 : index
    %c0_67 = arith.constant 0 : index
    %147 = vector.load %arg18[%c0_65, %c0_66, %c0_67] : memref<1x1x32xf32, #tpu.memory_space<vmem>>, vector<1x1x32xf32>
    %148 = vector.shape_cast %147 : vector<1x1x32xf32> to vector<1x32xf32>
    %c1_i32_68 = arith.constant 1 : i32
    %149 = tpu.dynamic_rotate %144 by %c1_i32_68 dim 0 : vector<16x64xf32>, i32 -> vector<16x64xf32>
    %c1_i32_69 = arith.constant 1 : i32
    %150 = vector.broadcast %c1_i32_69 : i32 to vector<16x1xi32>
    %151 = arith.cmpi sge, %2, %150 : vector<16x1xi32>
    %cst_70 = arith.constant 0.000000e+00 : f32
    %152 = vector.shape_cast %151 : vector<16x1xi1> to vector<16x1xi1>
    %153 = vector.broadcast %152 : vector<16x1xi1> to vector<16x64xi1>
    %154 = vector.broadcast %cst_70 : f32 to vector<16x64xf32>
    %155 = arith.select %153, %149, %154 : vector<16x64xi1>, vector<16x64xf32>
    %c15_i32_71 = arith.constant 15 : i32
    %156 = tpu.dynamic_rotate %144 by %c15_i32_71 dim 0 : vector<16x64xf32>, i32 -> vector<16x64xf32>
    %c15_i32_72 = arith.constant 15 : i32
    %157 = vector.broadcast %c15_i32_72 : i32 to vector<16x1xi32>
    %158 = arith.cmpi slt, %2, %157 : vector<16x1xi32>
    %cst_73 = arith.constant 0.000000e+00 : f32
    %159 = vector.shape_cast %158 : vector<16x1xi1> to vector<16x1xi1>
    %160 = vector.broadcast %159 : vector<16x1xi1> to vector<16x64xi1>
    %161 = vector.broadcast %cst_73 : f32 to vector<16x64xf32>
    %162 = arith.select %160, %156, %161 : vector<16x64xi1>, vector<16x64xf32>
    %163 = tpu.concatenate %155, %144, %162 in 1 : vector<16x64xf32>, vector<16x64xf32>, vector<16x64xf32> -> vector<16x192xf32>
    %164 = arith.truncf %163 : vector<16x192xf32> to vector<16x192xbf16>
    %cst_74 = arith.constant dense<0.000000e+00> : vector<16x32xf32>
    %165 = tpu.matmul %164, %146, %cst_74 {dimension_numbers = #tpu.dot_dimension_numbers<[1], [0], [0], [1], [0, 0, 1, 1], [], []>} : vector<16x192xbf16>, vector<192x32xbf16>, vector<16x32xf32> -> vector<16x32xf32>
    %166 = vector.broadcast %148 : vector<1x32xf32> to vector<16x32xf32>
    %167 = arith.addf %165, %166 : vector<16x32xf32>
    %168 = arith.addf %167, %119 : vector<16x32xf32>
    %c0_75 = arith.constant 0 : index
    %c0_76 = arith.constant 0 : index
    %c0_77 = arith.constant 0 : index
    %169 = vector.load %arg19[%c0_75, %c0_76, %c0_77] : memref<1x1x32xf32, #tpu.memory_space<vmem>>, vector<1x1x32xf32>
    %170 = vector.shape_cast %169 : vector<1x1x32xf32> to vector<1x32xf32>
    %c0_78 = arith.constant 0 : index
    %c0_79 = arith.constant 0 : index
    %c0_80 = arith.constant 0 : index
    %171 = vector.load %arg20[%c0_78, %c0_79, %c0_80] : memref<1x1x32xf32, #tpu.memory_space<vmem>>, vector<1x1x32xf32>
    %172 = vector.shape_cast %171 : vector<1x1x32xf32> to vector<1x32xf32>
    %cst_81 = arith.constant dense<0.000000e+00> : vector<16xf32>
    %173 = vector.multi_reduction <add>, %168, %cst_81 [1] : vector<16x32xf32> to vector<16xf32>
    %174 = vector.shape_cast %173 : vector<16xf32> to vector<16x1xf32>
    %cst_82 = arith.constant 3.200000e+01 : f32
    %175 = vector.broadcast %cst_82 : f32 to vector<16x1xf32>
    %176 = arith.divf %174, %175 : vector<16x1xf32>
    %177 = vector.broadcast %176 : vector<16x1xf32> to vector<16x32xf32>
    %178 = arith.subf %168, %177 : vector<16x32xf32>
    %179 = arith.mulf %178, %178 : vector<16x32xf32>
    %cst_83 = arith.constant dense<0.000000e+00> : vector<16xf32>
    %180 = vector.multi_reduction <add>, %179, %cst_83 [1] : vector<16x32xf32> to vector<16xf32>
    %181 = vector.shape_cast %180 : vector<16xf32> to vector<16x1xf32>
    %cst_84 = arith.constant 3.200000e+01 : f32
    %182 = vector.broadcast %cst_84 : f32 to vector<16x1xf32>
    %183 = arith.divf %181, %182 : vector<16x1xf32>
    %184 = vector.broadcast %176 : vector<16x1xf32> to vector<16x32xf32>
    %185 = arith.subf %168, %184 : vector<16x32xf32>
    %cst_85 = arith.constant 9.99999974E-6 : f32
    %186 = vector.broadcast %cst_85 : f32 to vector<16x1xf32>
    %187 = arith.addf %183, %186 : vector<16x1xf32>
    %188 = math.rsqrt %187 : vector<16x1xf32>
    %189 = vector.broadcast %188 : vector<16x1xf32> to vector<16x32xf32>
    %190 = arith.mulf %185, %189 : vector<16x32xf32>
    %191 = vector.broadcast %170 : vector<1x32xf32> to vector<16x32xf32>
    %192 = arith.mulf %190, %191 : vector<16x32xf32>
    %193 = vector.broadcast %172 : vector<1x32xf32> to vector<16x32xf32>
    %194 = arith.addf %192, %193 : vector<16x32xf32>
    %195 = vector.broadcast %6 : vector<16x1xf32> to vector<16x32xf32>
    %196 = arith.mulf %194, %195 : vector<16x32xf32>
    %c0_86 = arith.constant 0 : index
    %c0_87 = arith.constant 0 : index
    %197 = vector.load %arg22[%c0_86, %c0_87] : memref<16x32xf32, #tpu.memory_space<vmem>>, vector<16x32xf32>
    tpu.vector_store %arg22[%c0_86, %c0_87], %196 {strides = array<i32>} : memref<16x32xf32, #tpu.memory_space<vmem>>, vector<16x32xf32>,
    %c1_i32_88 = arith.constant 1 : i32
    %198 = arith.cmpi eq, %arg1, %c1_i32_88 : i32
    %199 = arith.extui %198 : i1 to i32
    %c0_i32_89 = arith.constant 0 : i32
    %200 = arith.cmpi ne, %199, %c0_i32_89 : i32
    scf.if %200 {
      %c0_90 = arith.constant 0 : index
      %c0_91 = arith.constant 0 : index
      %c0_92 = arith.constant 0 : index
      %201 = vector.load %arg21[%c0_90, %c0_91, %c0_92] : memref<1x16x32xf32, #tpu.memory_space<vmem>>, vector<1x16x32xf32>
      %202 = vector.shape_cast %201 : vector<1x16x32xf32> to vector<16x32xf32>
      %203 = vector.shape_cast %196 : vector<16x32xf32> to vector<1x16x32xf32>
      tpu.vector_store %arg21[%c0_90, %c0_91, %c0_92], %203 {strides = array<i32>} : memref<1x16x32xf32, #tpu.memory_space<vmem>>, vector<1x16x32xf32>,
    } else {
    }
    return
  }
  func.func @transform_0(%arg0: i32, %arg1: i32, %arg2: memref<2xi32, #tpu.memory_space<smem>>) -> (i32, i32, i32) {
    %c0_i32 = arith.constant 0 : i32
    %c0_i32_0 = arith.constant 0 : i32
    %c0_i32_1 = arith.constant 0 : i32
    return %arg0, %c0_i32, %c0_i32_0 : i32, i32, i32
  }
  func.func @transform_1(%arg0: i32, %arg1: i32, %arg2: memref<2xi32, #tpu.memory_space<smem>>) -> (i32, i32) {
    %c0_i32 = arith.constant 0 : i32
    %c0_i32_0 = arith.constant 0 : i32
    %c0_i32_1 = arith.constant 0 : i32
    return %c0_i32, %c0_i32_0 : i32, i32
  }
  func.func @transform_2(%arg0: i32, %arg1: i32, %arg2: memref<2xi32, #tpu.memory_space<smem>>) -> (i32, i32, i32) {
    %c0_i32 = arith.constant 0 : i32
    %c0_i32_0 = arith.constant 0 : i32
    %c0_i32_1 = arith.constant 0 : i32
    return %arg1, %c0_i32, %c0_i32_0 : i32, i32, i32
  }
  func.func @transform_3(%arg0: i32, %arg1: i32, %arg2: memref<2xi32, #tpu.memory_space<smem>>) -> (i32, i32, i32) {
    %c0_i32 = arith.constant 0 : i32
    %c0_i32_0 = arith.constant 0 : i32
    %c0_i32_1 = arith.constant 0 : i32
    return %arg1, %c0_i32, %c0_i32_0 : i32, i32, i32
  }
  func.func @transform_4(%arg0: i32, %arg1: i32, %arg2: memref<2xi32, #tpu.memory_space<smem>>) -> (i32, i32, i32) {
    %c0_i32 = arith.constant 0 : i32
    %c0_i32_0 = arith.constant 0 : i32
    %c0_i32_1 = arith.constant 0 : i32
    return %arg1, %c0_i32, %c0_i32_0 : i32, i32, i32
  }
  func.func @transform_5(%arg0: i32, %arg1: i32, %arg2: memref<2xi32, #tpu.memory_space<smem>>) -> (i32, i32, i32) {
    %c0_i32 = arith.constant 0 : i32
    %c0_i32_0 = arith.constant 0 : i32
    %c0_i32_1 = arith.constant 0 : i32
    return %arg1, %c0_i32, %c0_i32_0 : i32, i32, i32
  }
  func.func @transform_6(%arg0: i32, %arg1: i32, %arg2: memref<2xi32, #tpu.memory_space<smem>>) -> (i32, i32, i32) {
    %c0_i32 = arith.constant 0 : i32
    %c0_i32_0 = arith.constant 0 : i32
    %c0_i32_1 = arith.constant 0 : i32
    return %arg1, %c0_i32, %c0_i32_0 : i32, i32, i32
  }
  func.func @transform_7(%arg0: i32, %arg1: i32, %arg2: memref<2xi32, #tpu.memory_space<smem>>) -> (i32, i32, i32) {
    %c0_i32 = arith.constant 0 : i32
    %c0_i32_0 = arith.constant 0 : i32
    %c0_i32_1 = arith.constant 0 : i32
    return %arg1, %c0_i32, %c0_i32_0 : i32, i32, i32
  }
  func.func @transform_8(%arg0: i32, %arg1: i32, %arg2: memref<2xi32, #tpu.memory_space<smem>>) -> (i32, i32, i32) {
    %c0_i32 = arith.constant 0 : i32
    %c0_i32_0 = arith.constant 0 : i32
    %c0_i32_1 = arith.constant 0 : i32
    return %arg1, %c0_i32, %c0_i32_0 : i32, i32, i32
  }
  func.func @transform_9(%arg0: i32, %arg1: i32, %arg2: memref<2xi32, #tpu.memory_space<smem>>) -> (i32, i32, i32) {
    %c0_i32 = arith.constant 0 : i32
    %c0_i32_0 = arith.constant 0 : i32
    %c0_i32_1 = arith.constant 0 : i32
    return %arg1, %c0_i32, %c0_i32_0 : i32, i32, i32
  }
  func.func @transform_10(%arg0: i32, %arg1: i32, %arg2: memref<2xi32, #tpu.memory_space<smem>>) -> (i32, i32, i32) {
    %c0_i32 = arith.constant 0 : i32
    %c0_i32_0 = arith.constant 0 : i32
    %c0_i32_1 = arith.constant 0 : i32
    return %arg1, %c0_i32, %c0_i32_0 : i32, i32, i32
  }
  func.func @transform_11(%arg0: i32, %arg1: i32, %arg2: memref<2xi32, #tpu.memory_space<smem>>) -> (i32, i32, i32) {
    %c0_i32 = arith.constant 0 : i32
    %c0_i32_0 = arith.constant 0 : i32
    %c0_i32_1 = arith.constant 0 : i32
    return %arg1, %c0_i32, %c0_i32_0 : i32, i32, i32
  }
  func.func @transform_12(%arg0: i32, %arg1: i32, %arg2: memref<2xi32, #tpu.memory_space<smem>>) -> (i32, i32, i32) {
    %c0_i32 = arith.constant 0 : i32
    %c0_i32_0 = arith.constant 0 : i32
    %c0_i32_1 = arith.constant 0 : i32
    return %arg1, %c0_i32, %c0_i32_0 : i32, i32, i32
  }
  func.func @transform_13(%arg0: i32, %arg1: i32, %arg2: memref<2xi32, #tpu.memory_space<smem>>) -> (i32, i32, i32) {
    %c0_i32 = arith.constant 0 : i32
    %c0_i32_0 = arith.constant 0 : i32
    %c0_i32_1 = arith.constant 0 : i32
    return %arg1, %c0_i32, %c0_i32_0 : i32, i32, i32
  }
  func.func @transform_14(%arg0: i32, %arg1: i32, %arg2: memref<2xi32, #tpu.memory_space<smem>>) -> (i32, i32, i32) {
    %c0_i32 = arith.constant 0 : i32
    %c0_i32_0 = arith.constant 0 : i32
    %c0_i32_1 = arith.constant 0 : i32
    return %arg1, %c0_i32, %c0_i32_0 : i32, i32, i32
  }
  func.func @transform_15(%arg0: i32, %arg1: i32, %arg2: memref<2xi32, #tpu.memory_space<smem>>) -> (i32, i32, i32) {
    %c0_i32 = arith.constant 0 : i32
    %c0_i32_0 = arith.constant 0 : i32
    %c0_i32_1 = arith.constant 0 : i32
    return %arg1, %c0_i32, %c0_i32_0 : i32, i32, i32
  }
  func.func @transform_16(%arg0: i32, %arg1: i32, %arg2: memref<2xi32, #tpu.memory_space<smem>>) -> (i32, i32, i32) {
    %c0_i32 = arith.constant 0 : i32
    %c0_i32_0 = arith.constant 0 : i32
    %c0_i32_1 = arith.constant 0 : i32
    return %arg1, %c0_i32, %c0_i32_0 : i32, i32, i32
  }
  func.func @transform_17(%arg0: i32, %arg1: i32, %arg2: memref<2xi32, #tpu.memory_space<smem>>) -> (i32, i32, i32) {
    %c0_i32 = arith.constant 0 : i32
    %c0_i32_0 = arith.constant 0 : i32
    %c0_i32_1 = arith.constant 0 : i32
    return %arg1, %c0_i32, %c0_i32_0 : i32, i32, i32
  }
  func.func @transform_18(%arg0: i32, %arg1: i32, %arg2: memref<2xi32, #tpu.memory_space<smem>>) -> (i32, i32, i32) {
    %c0_i32 = arith.constant 0 : i32
    %c0_i32_0 = arith.constant 0 : i32
    %c0_i32_1 = arith.constant 0 : i32
    return %arg0, %c0_i32, %c0_i32_0 : i32, i32, i32
  }
}

</mosaic_0001>

<bundles_post_ra>
// kernel: tpu_custom_call.1
= control target key start
LH: loop header
LB: loop body
LE: loop exit
PB: predicated region body
PF: predicated region fallthrough
CT: control target
= control target key end

     0   :  { %s3130_s0 = inlined_call_operand.vmem [shape: s32[2], index: 0, kind: input, shape index: {}]   ;;  %s3131_s1 = inlined_call_operand.vmem [shape: f32[2,16,32], index: 1, kind: input, shape index: {}]   ;;  %s3132_s2 = inlined_call_operand.vmem [shape: f32[16,32], index: 2, kind: input, shape index: {}]   ;;  %s3133_s3 = inlined_call_operand.vmem [shape: bf16[2,32,32], index: 3, kind: input, shape index: {}]   ;;  %s3134_s4 = inlined_call_operand.vmem [shape: f32[2,1,32], index: 4, kind: input, shape index: {}]   ;;  %s3135_s5 = inlined_call_operand.vmem [shape: bf16[2,32,32], index: 5, kind: input, shape index: {}]   ;;  %s3136_s6 = inlined_call_operand.vmem [shape: f32[2,1,32], index: 6, kind: input, shape index: {}]   ;;  %s3137_s7 = inlined_call_operand.vmem [shape: bf16[2,32,32], index: 7, kind: input, shape index: {}]   ;;  %s3138_s8 = inlined_call_operand.vmem [shape: f32[2,1,32], index: 8, kind: input, shape index: {}]   ;;  %s3139_s9 = inlined_call_operand.vmem [shape: bf16[2,32,32], index: 9, kind: input, shape index: {}]   ;;  %s3140_s10 = inlined_call_operand.vmem [shape: f32[2,1,32], index: 10, kind: input, shape index: {}]   ;;  %s3141_s11 = inlined_call_operand.vmem [shape: f32[2,1,32], index: 11, kind: input, shape index: {}]   ;;  %s3142_s12 = inlined_call_operand.vmem [shape: f32[2,1,32], index: 12, kind: input, shape index: {}]   ;;  %s3143_s13 = inlined_call_operand.vmem [shape: bf16[2,96,64], index: 13, kind: input, shape index: {}]   ;;  %s3144_s14 = inlined_call_operand.vmem [shape: f32[2,1,64], index: 14, kind: input, shape index: {}]   ;;  %s3145_s15 = inlined_call_operand.vmem [shape: bf16[2,192,32], index: 15, kind: input, shape index: {}]   ;;  %s3146_s16 = inlined_call_operand.vmem [shape: f32[2,1,32], index: 16, kind: input, shape index: {}]   ;;  %s3147_s17 = inlined_call_operand.vmem [shape: f32[2,1,32], index: 17, kind: input, shape index: {}]   ;;  %s3148_s18 = inlined_call_operand.vmem [shape: f32[2,1,32], index: 18, kind: input, shape index: {}]   ;;  %s3149_s19 = inlined_call_operand.hbm [shape: f32[2,16,32], index: 19, kind: output, shape index: {}]  }
   0x1   :  { %3167 = sst [smem:[#allocation23_spill]] %s3130_s0 }
   0x2   :  { %3168 = sst [smem:[#allocation24_spill]] %s3131_s1  ;;  %s3182_s20 = sld [smem:[#allocation23_spill]] }
   0x3   :  { %3169 = sst [smem:[#allocation25_spill]] %s3132_s2 }
   0x4   :  { %3170 = sst [smem:[#allocation26_spill]] %s3133_s3 }
   0x5   :  { %3171 = sst [smem:[#allocation27_spill]] %s3135_s5 }
   0x6   :  { %3172 = sst [smem:[#allocation28_spill]] %s3137_s7 }
   0x7   :  { %3173 = sst [smem:[#allocation29_spill]] %s3138_s8 }
   0x8   :  { %3174 = sst [smem:[#allocation30_spill]] %s3139_s9 }
   0x9   :  { %3175 = sst [smem:[#allocation31_spill]] %s3140_s10 }
   0xa   :  { %3176 = sst [smem:[#allocation32_spill]] %s3142_s12 }
   0xb   :  { %3177 = sst [smem:[#allocation33_spill]] %s3143_s13  ;;  %s24_s13 = sshll.u32 %s3182_s20, 4  ;;  %s25_s13 = int_to_ptr.vmem [resolvable:$true] %s24_s13 }
   0xc   :  { %3178 = sst [smem:[#allocation34_spill]] %s3144_s14  ;;  %s2416_s21 = scalar_lea.vmem %s25_s13, 16 }
   0xd   :  { %3179 = sst [smem:[#allocation35_spill]] %s3145_s15  ;;  %p2417_p0 = scmp.ne.s32.totalorder %s25_s13, %s2416_s21 }
   0xe   :  { %3180 = sst [smem:[#allocation36_spill]] %s3148_s18  ;;  %p2421_p1 = scmp.lt.s32.totalorder %s25_s13, %s25_s13 }
   0xf   :  { %3181 = sst [smem:[#allocation37_spill]] %s3149_s19  ;;  %p2422_p2 = scmp.lt.s32.totalorder %s2416_s21, %s2416_s21 }
  0x11   :  { %p2423_p3 = por %p2422_p2, %p2421_p1 }
  0x13   :  { %p2424_p4 = pnand %p2423_p3, %p2417_p0 }
  0x15   :  { %2427 = shalt.err (!%p2424_p4)  }
  0x16   :  { %s2526_s1 = smov [#allocation4]  }
  0x17   :  { %27 = dma.vmem_to_smem %s25_s13, 16, %s2526_s1, [#allocation3] }
  0x18   :  { %2488 = dma.done.wait [#allocation3], 16 }
  0x19   :  { %2489 = vsyncadd [#allocation3], 4294967280 }
  0x1a   :  { %29 = sfence }
  0x1b   :  { %30 = vsyncpa [#allocation6], 0 }
  0x1c   :  { %32 = vsyncpa [#allocation6 + $0x1], 0  ;;  %s2640_s22 = smov 0   ;;  %s2642_s2 = smov 0  }
  0x1d   :  { %s2644_s23 = smov 0   ;;  %s2646_s24 = smov 0  }
  0x1e   :  { %s2648_s25 = smov 0   ;;  %s2650_s3 = smov 0  }
  0x1f   :  { %s2652_s26 = smov 0   ;;  %s2654_s13 = smov 0  }
  0x20 LB: > { %3183 = sst [smem:[#allocation9_spill]] %s2496_s22  ;;  %s2085_s27 = sadd.s32 4294967295, %s2524_s13   ;;  %s2524_s13 = sphi %s2654_s13, %s38_s13   ;;  %s2520_s26 = sphi %s2652_s26, %s3241_s26   ;;  %s2516_s3 = sphi %s2650_s3, %s3240_s3   ;;  %s2512_s25 = sphi %s2648_s25, %s3239_s25   ;;  %s2508_s24 = sphi %s2646_s24, %s3238_s24   ;;  %s2504_s23 = sphi %s2644_s23, %s3237_s23   ;;  %s2500_s2 = sphi %s2642_s2, %s3236_s2   ;;  %s2496_s22 = sphi %s2640_s22, %s3235_s22  }
  0x21   : > { %3184 = sst [smem:[#allocation10_spill]] %s2500_s2  ;;  %s2086_s28 = sadd.s32 4294967294, %s2524_s13  }
  0x22   : > { %3185 = sst [smem:[#allocation11_spill]] %s2504_s23  ;;  %s47_s29 = sadd.s32 1, %s2516_s3 }
  0x23   : > { %3186 = sst [smem:[#allocation12_spill]] %s2508_s24  ;;  %p48_p5 = scmp.ge.s32.totalorder %s47_s29, 2 }
  0x24   : > { %3187 = sst [smem:[#allocation13_spill]] %s2512_s25  ;;  %s50_s0 = sadd.s32 1, %s2520_s26 }
  0x25   : > { %3188 = sst [smem:[#allocation14_spill]] %s2516_s3  ;;  %p530_p6 = scmp.ne.s32.totalorder %s2504_s23, %s2500_s2 }
  0x26   : > { %3189 = sst [smem:[#allocation15_spill]] %s2520_s26  ;;  %p531_p7 = scmp.eq.s32.totalorder %s2085_s27, 3 }
  0x27   : > { %3190 = sst [smem:[#allocation16_spill]] %s2524_s13  ;;  %s3243_s29 = smov (%p48_p5, %s47_s29), 0 }
  0x28   : > { %3191 = sst [smem:[#allocation17_spill]] %s3243_s29  ;;  %s3245_s0 = smov (!%p48_p5, %s50_s0), %s2520_s26 }
  0x29   : > { %p2689_p8 = por %p531_p7, %p530_p6  ;;  %p536_p9 = scmp.ne.s32.totalorder %s2500_s2, %s2496_s22 }
  0x2a   : > { %p52_p10 = scmp.ge.s32.totalorder %s3245_s0, 2  ;;  %p537_p11 = scmp.eq.s32.totalorder %s2086_s28, 3 }
  0x2b   : > { %s3192_s30 = scalar_select %p2689_p8, 1, 0 }
  0x2c   : > { %p2089_p12 = scmp.ge.s32.totalorder %s2524_s13, 1  ;;  %p674_p13 = scmp.lt.s32.totalorder %s2524_s13, 5 }
  0x2d   : > { %3193 = sst [smem:[#allocation18_spill]] %s3192_s30  ;;  %s3247_s0 = smov (%p52_p10, %s3245_s0), 0 }
  0x2e   : > { %3194 = sst [smem:[#allocation19_spill]] %s3247_s0  ;;  %p2699_p0 = por %p537_p11, %p536_p9 }
  0x2f   : > { %p675_p1 = pnand %p2089_p12, %p674_p13  ;;  %s517_s21 = ssub.s32 %s2520_s26, %s3247_s0 }
  0x30   : > { %s3195_s20 = scalar_select %p2699_p0, 1, 0 }
  0x31   : > { %s520_s1 = sadd.s32 1, %s2504_s23  ;;  %p518_p2 = scmp.eq.s32.totalorder %s517_s21, 0 }
  0x32   : > { %3196 = sst [smem:[#allocation20_spill]] %s3195_s20  ;;  %678 = sbr.rel (%p675_p1) target bundleno = 2877 (0xb3d), region = 92 }
  0x33   : > { %s2707_s27 = scalar_select %p518_p2, %s2504_s23, %s520_s1  }
  0x35   : > { %3197 = sst [smem:[#allocation21_spill]] %s2707_s27 }
  0x39   : > { %s3153_s28 = sand.u32 1, %s2500_s2   ;;  %p788_p3 = scmp.lt.s32.totalorder %s2512_s25, 1  ;;  %v855_v0 = vlaneseq  ;;  %v2527_v5 = vmov 0.0  }
  0x3a   : > { %s2713_s29 = sshll.u32 %s3153_s28, 4  ;;  %p793_p4 = scmp.lt.s32.totalorder %s2508_s24, 1 }
  0x3b   : > { %s854_s0 = sld [smem:[#allocation4 + %s2512_s25]]  ;;  %v2717_v1 = vshrl.u32 %v855_v0, 7  ;;  %v2726_v3 = vand.u32 127, %v855_v0 }
  0x3c   : > { %s789_s21 = scalar_select %p788_p3, %s2512_s25, 1 }
  0x3d   : > { %s2721_s1 = scalar_select %p793_p4, %s2508_s24, 1  ;;  %v2724_v2 = vadd.s32 8, %v2717_v1 }
  0x3e   : > { %s2158_s26 = sshll.u32 %s789_s21, 4  ;;  %s3198_s27 = sld [smem:[#allocation24_spill]] }
  0x3f   : > { %s2159_s20 = sshll.u32 %s2721_s1, 4  ;;  %s3199_s19 = sld [smem:[#allocation26_spill]] }
  0x40   : > { %s3200_s5 = sld [smem:[#allocation27_spill]]  ;;  %s3201_s7 = sld [smem:[#allocation28_spill]] }
  0x41   : > { %v2752_v4 = vstv %s854_s0  ;;  %s3203_s9 = sld [smem:[#allocation30_spill]]  ;;  %s2263_s3 = smul.u32 48, %s2721_s1 }
  0x42   : > { %vm859_vm0 = vcmp.lt.s32.totalorder %v2717_v1, %v2752_v4  ;;  %vm860_vm1 = vcmp.lt.s32.totalorder %v2724_v2, %v2752_v4  ;;  %vm867_vm2 = vcmp.lt.s32.totalorder %v2726_v3, %v2752_v4  ;;  %s849_s28 = scalar_lea.vmem %s3147_s17, %s2721_s1  ;;  %s3209_s13 = sld [smem:[#allocation35_spill]] }
  0x43   : > { %v2782_v6 = vsel %vm859_vm0, 1.0, %v2527_v5  ;;  %v2788_v7 = vsel %vm860_vm1, 1.0, %v2527_v5  ;;  %s3210_s18 = sld [smem:[#allocation36_spill]]  ;;  %s3211_s25 = sld [smem:[#allocation12_spill]] }
  0x44   : > { %s2731_s23 = scalar_lea.vmem %s3198_s27, %s2158_s26  ;;  %s2264_s27 = smul.u32 96, %s2721_s1 }
  0x45   : > { %s2737_s30 = scalar_lea.vmem %s3199_s19, %s2159_s20 }
  0x46   : > { %s2746_s15 = scalar_lea.vmem %s3200_s5, %s2159_s20  ;;  %s2757_s2 = scalar_lea.vmem %s3201_s7, %s2159_s20 }
  0x47   : > { %s2772_s21 = scalar_lea.vmem %s3203_s9, %s2159_s20  ;;  %s846_s7 = scalar_lea.vmem %s3146_s16, %s2721_s1 }
  0x48   : > { %3204 = sst [smem:[#allocation22_spill]] %s2772_s21  ;;  %s3208_s21 = sld [smem:[#allocation33_spill]] }
  0x49   : > { %s2820_s12 = scalar_lea.vmem %s3209_s13, %s2264_s27  ;;  %s852_s14 = scalar_lea.vmem %s3210_s18, %s2721_s1 }
  0x4a   : > { %s2827_s5 = scalar_lea.vmem [#allocation5], %s2713_s29  ;;  %p2105_p5 = scmp.ne.s32.totalorder %s3211_s25, 0 }
  0x4b   : > { %v872_v8 = vld [vmem:[%s2731_s23] sm:$0xff] (!%p2105_p5)  ;;  %v873_v10 = vld [vmem:[%s2731_s23 + $0x8] sm:$0xff] (!%p2105_p5)  ;;  %vm882_vm3 = vcmask (!%p2105_p5), 261120  }
  0x4c   : > { %871 = sbr.rel (%p2105_p5) target bundleno = 89 (0x59), region = 96 }
  0x4e   : > { %s2811_s8 = scalar_lea.vmem %s3208_s21, %s2263_s3  ;;  %s3212_s21 = sld [smem:[#allocation25_spill]] (!%p2105_p5) }
  0x54   : > { %v874_v9 = vld [vmem:[%s3212_s21] sm:$0xff]  ;;  %v875_v12 = vld [vmem:[%s3212_s21 + $0x8] sm:$0xff] }
  0x55   : > { %v878_v11 = vsel %vm859_vm0, %v874_v9, 0.0  ;;  %v879_v14 = vsel %vm860_vm1, %v875_v12, 0.0 }
  0x56   : > { %v880_v13 = vadd.f32 %v878_v11, %v872_v8  ;;  %v881_v15 = vadd.f32 %v879_v14, %v873_v10 }
  0x58   : > { %883 = vst.msk [vmem:[#allocation2] sm:$0xff] %vm882_vm3, %v880_v13  ;;  %884 = vst.msk [vmem:[#allocation2 + $0x8] sm:$0xff] %vm882_vm3, %v881_v15 }
  0x59 PF: > { %2191 = vmatprep.subr.bf16.mxu0 %v2527_v5  ;;  %v2366_v16 = vld [vmem:[%s2737_s30] sm:$0xff]   ;;  %2215 = vmatprep.subr.bf16.mxu1 %v2527_v5  ;;  %v2367_v17 = vld [vmem:[%s2737_s30 + $0x8] sm:$0xff]   ;;  %vm2528_vm4 = vmmov 0   ;;  %vm911_vm5 = vcmask 261120   ;;  %s3214_s0 = scalar_lea.vmem %s3136_s6, %s2721_s1  ;;  %vm1087_vm6 = vcmask 130048   ;;  %s2529_s3 = smov 112  }
  0x5a   : > { %2195 = vmatprep.mubr.msk.bf16.mxu0 %vm2528_vm4, %v2527_v5  ;;  %2217 = vmatprep.mubr.msk.bf16.mxu1 %vm2528_vm4, %v2527_v5  ;;  %v2368_v20 = vld [vmem:[%s2746_s15] sm:$0xff]   ;;  %v2369_v22 = vld [vmem:[%s2746_s15 + $0x8] sm:$0xff]   ;;  %s3213_s15 = scalar_lea.vmem %s3134_s4, %s2721_s1  ;;  %s3215_s20 = sld [smem:[#allocation29_spill]]  ;;  %vm1487_vm7 = vcmp.lt.s32.totalorder %v2717_v1, 7  ;;  %vm1491_vm8 = vcmp.lt.s32.totalorder %v2724_v2, 15  ;;  %vm1474_vm9 = vcmp.lt.s32.totalorder %v2717_v1, 1 }
  0x5b   : > { %2192 = vmatpush3.bf16.msra.mxu0 %v2366_v16  ;;  %v2106_v23 = vld [vmem:[%s3213_s15] ss:$0 sm:$0xff]  ;;  %v2371_v41 = vld [vmem:[%s2757_s2 + $0x8] sm:$0xff]   ;;  %s3217_s19 = sld [smem:[#allocation22_spill]]  ;;  %s2530_s26 = smov 16   ;;  %vm1477_vm10 = vcmp.ge.s32.totalorder %v2717_v1, 1 }
  0x5c   : > { %2193 = vmatprep.subr.bf16.mxu0 %v2527_v5  ;;  %v2110_v31 = vld [vmem:[%s3214_s0] ss:$0 sm:$0xff]  ;;  %s3218_s10 = sld [smem:[#allocation31_spill]]  ;;  %s3220_s29 = scalar_lea.vmem %s3141_s11, %s2721_s1  ;;  %vm1516_vm11 = vcmask 523264   ;;  %vm1562_vm12 = vcmask 785408  }
  0x5d   : > { %v2370_v40 = vld [vmem:[%s2757_s2] sm:$0xff]   ;;  %s3221_s13 = sld [smem:[#allocation32_spill]] }
  0x5e   : > { %v2136_v2 = vld [vmem:[%s846_s7] ss:$0 sm:$0xff] }
  0x5f   : > { %v2852_v18 = vld [vmem:[#allocation2] sm:$0xff]  ;;  %v2854_v19 = vld [vmem:[#allocation2 + $0x8] sm:$0xff]  ;;  %2194 = vmatpush3.bf16.msra.mxu0 %v2367_v17 }
  0x60   : > { %v887_v21 = vpack.c.bf16 %v2854_v19, %v2852_v18  ;;  %2199 = vmatprep.subr.bf16.mxu0 %v2527_v5  ;;  %s3216_s24 = scalar_lea.vmem %s3215_s20, %s2721_s1  ;;  %s3223_s20 = sld [smem:[#allocation34_spill]] }
  0x61   : > { %v2114_v15 = vld [vmem:[%s3216_s24] ss:$0 sm:$0xff] }
  0x62   : > { %2196 = vmatmul.mubr.msk.bf16.vlgmr.msra.gmra.mrb[0].mxu0 %vm911_vm5, %v887_v21  ;;  %s3219_s27 = scalar_lea.vmem %s3218_s10, %s2721_s1 }
  0x63   : > { %2200 = vmatpush3.bf16.msra.mxu0 %v2368_v20  ;;  %2203 = vmatprep.mubr.msk.bf16.mxu0 %vm2528_vm4, %v2527_v5  ;;  %s3222_s0 = scalar_lea.vmem %s3221_s13, %s2721_s1 }
  0x64   : > { %2201 = vmatprep.subr.bf16.mxu0 %v2527_v5 }
  0x66   : > { %s3224_s24 = scalar_lea.vmem %s3223_s20, %s2721_s1 }
  0x67   : > { %2202 = vmatpush3.bf16.msra.mxu0 %v2369_v22 }
  0x68   : > { %2207 = vmatprep.subr.bf16.mxu0 %v2527_v5 }
  0x6a   : > { %2204 = vmatmul.mubr.msk.bf16.vlgmr.msra.gmra.mrb[4].mxu0 %vm911_vm5, %v887_v21 }
  0x6b   : > { %2211 = vmatprep.mubr.msk.bf16.mxu0 %vm2528_vm4, %v2527_v5  ;;  %2208 = vmatpush3.bf16.msra.mxu0 %v2370_v40 }
  0x6c   : > { %2209 = vmatprep.subr.bf16.mxu0 %v2527_v5 }
  0x6f   : > { %2210 = vmatpush3.bf16.msra.mxu0 %v2371_v41 }
  0x70   : > { %2221 = vmatprep.subr.bf16.mxu0 %v2527_v5 }
  0x72   : > { %2212 = vmatmul.mubr.msk.bf16.vlgmr.msra.gmra.mrb[8].mxu0 %vm911_vm5, %v887_v21 }
  0x73   : > { %2223 = vmatprep.mubr.msk.bf16.mxu0 %vm2528_vm4, %v2527_v5 }
 0x135   : > { %v949_v24 = vpop.f32.mrb[0].mxu0 }
 0x136   : > { %v2197_v25 = vpop.f32.mrb[1].mxu0  ;;  %v950_v27 = vadd.f32 %v2106_v23, %v949_v24 }
 0x137   : > { %v952_v26 = vpop.f32.mrb[2].mxu0 }
 0x138   : > { %v953_v28 = vadd.f32 %v2106_v23, %v952_v26  ;;  %v2198_v29 = vpop.f32.mrb[3].mxu0 }
 0x13a   : > { %v1084_v30 = vpack.c.bf16 %v953_v28, %v950_v27 }
 0x13d   : > { %v1013_v32 = vpop.f32.mrb[4].mxu0 }
 0x13e   : > { %v2205_v33 = vpop.f32.mrb[5].mxu0  ;;  %v1014_v35 = vadd.f32 %v2110_v31, %v1013_v32 }
 0x13f   : > { %v1016_v34 = vpop.f32.mrb[6].mxu0 }
 0x140   : > { %v1017_v36 = vadd.f32 %v2110_v31, %v1016_v34  ;;  %v2206_v37 = vpop.f32.mrb[7].mxu0 }
 0x142   : > { %v1085_v38 = vpack.c.bf16 %v1017_v36, %v1014_v35 }
 0x144   : > { %1210 = vrot.lane.b32.xlu0 %v1085_v38, %s2529_s3  ;;  %v1092_v39 = vsel %vm1087_vm6, %v1085_v38, 0 }
 0x145   : > { %2216 = vmatpush3.bf16.xpose.msra.mxu1 %v1092_v39  ;;  %v1077_v12 = vpop.f32.mrb[8].mxu0 }
 0x146   : > { %2227 = vmatprep.subr.bf16.mxu1 %v2527_v5  ;;  %v2213_v13 = vpop.f32.mrb[9].mxu0  ;;  %v1078_v17 = vadd.f32 %v2114_v15, %v1077_v12 }
 0x147   : > { %v1080_v14 = vpop.f32.mrb[10].mxu0 }
 0x148   : > { %1207 = vrot.lane.b32.xlu0 %v1084_v30, %s2529_s3  ;;  %v2214_v16 = vpop.f32.mrb[11].mxu0  ;;  %v1081_v20 = vadd.f32 %v2114_v15, %v1080_v14 }
 0x14a   : > { %v1086_v21 = vpack.c.bf16 %v1081_v20, %v1078_v17 }
 0x14c   : > { %2218 = vmatmul.mubr.msk.bf16.vlgmr.msra.gmra.mrb[0].mxu1 %vm1087_vm6, %v1084_v30  ;;  %2222 = vmatpush3.bf16.msra.mxu0 %v1086_v21 }
 0x14d   : > { %2229 = vmatprep.mubr.msk.bf16.mxu1 %vm2528_vm4, %v2527_v5  ;;  %2233 = vmatprep.subr.bf16.mxu0 %v2527_v5 }
 0x1b6   : > { %v1211_v42 = vpop.permute.xlu0 %1210 }
 0x1b7   : > { %v1216_v43 = vsel %vm1087_vm6, %v1211_v42, 0 }
 0x1b8   : > { %2228 = vmatpush3.bf16.xpose.msra.mxu1 %v1216_v43 }
 0x1b9   : > { %2239 = vmatprep.subr.bf16.mxu1 %v2527_v5 }
 0x1ba   : > { %v1208_v44 = vpop.permute.xlu0 %1207 }
 0x1bf   : > { %2230 = vmatmul.mubr.msk.bf16.vlgmr.msra.gmra.mrb[4].mxu1 %vm1087_vm6, %v1208_v44 }
 0x1c0   : > { %2243 = vmatprep.mubr.msk.bf16.mxu1 %vm2528_vm4, %v2527_v5 }
 0x21f   : > { %v1128_v45 = vpop.f32.mrb[0].mxu1 }
 0x220   : > { %v1137_v46 = vsel %vm867_vm2, %v1128_v45, -1e+30  ;;  %v2219_v47 = vpop.f32.mrb[1].mxu1 }
 0x221   : > { %v1131_v48 = vpop.f32.mrb[2].mxu1  ;;  %v1139_v49 = vsel %vm1087_vm6, %v1137_v46, -inf  ;;  %v2372_v47 = vld [vmem:[%s3217_s19] sm:$0xff]  }
 0x222   : > { %v1138_v50 = vsel %vm867_vm2, %v1131_v48, -1e+30  ;;  %1140 = vmax.xlane.f32.xlu1 %v1139_v49  ;;  %v2220_v51 = vpop.f32.mrb[3].mxu1  ;;  %2240 = vmatpush3.bf16.msra.mxu1 %v2372_v47 }
 0x223   : > { %v1142_v52 = vsel %vm1087_vm6, %v1138_v50, -inf  ;;  %2241 = vmatprep.subr.bf16.mxu1 %v2527_v5 }
 0x226   : > { %1143 = vmax.xlane.f32.xlu1 %v1142_v52  ;;  %v2373_v52 = vld [vmem:[%s3217_s19 + $0x8] sm:$0xff]  }
 0x227   : > { %2242 = vmatpush3.bf16.msra.mxu1 %v2373_v52 }
 0x292   : > { %v1252_v53 = vpop.f32.mrb[4].mxu1 }
 0x293   : > { %v1259_v54 = vsel %vm867_vm2, %v1252_v53, -1e+30  ;;  %v2231_v55 = vpop.f32.mrb[5].mxu1 }
 0x294   : > { %v1255_v56 = vpop.f32.mrb[6].mxu1  ;;  %v1261_v57 = vsel %vm1087_vm6, %v1259_v54, -inf }
 0x295   : > { %v1260_v58 = vsel %vm867_vm2, %v1255_v56, -1e+30  ;;  %1262 = vmax.xlane.f32.xlu0 %v1261_v57  ;;  %v2232_v59 = vpop.f32.mrb[7].mxu1 }
 0x296   : > { %v1264_v60 = vsel %vm1087_vm6, %v1260_v58, -inf }
 0x297   : > { %1265 = vmax.xlane.f32.xlu1 %v1264_v60 }
 0x2af   : > { %v1141_v61 = vpop.xlane.xlu1 %1140 }
 0x2b0   : > { %v1145_v62 = vsub.f32 %v1137_v46, %v1141_v61 }
 0x2b2   : > { %v1147_v63 = vmul.f32 1.442695, %v1145_v62 }
 0x2b3   : > { %v1144_v0 = vpop.xlane.xlu1 %1143 }
 0x2b4   : > { %2392 = vpow2.f32 %v1147_v63  ;;  %v1146_v8 = vsub.f32 %v1138_v50, %v1144_v0  ;;  %v2122_v0 = vld [vmem:[%s3219_s27] ss:$0 sm:$0xff] }
 0x2b6   : > { %v1149_v9 = vmul.f32 1.442695, %v1146_v8 }
 0x2b8   : > { %2394 = vpow2.f32 %v1149_v9 }
 0x2be   : > { %v2393_v10 = vpop.eup %2392 }
 0x2bf   : > { %v1151_v11 = vsel %vm1087_vm6, %v2393_v10, 0.0 }
 0x2c0   : > { %1152 = vadd.xlane.f32.xlu1 %v1151_v11 }
 0x2c2   : > { %v2395_v3 = vpop.eup %2394 }
 0x2c3   : > { %v1154_v4 = vsel %vm1087_vm6, %v2395_v3, 0.0 }
 0x2c4   : > { %1155 = vadd.xlane.f32.xlu1 %v1154_v4 }
 0x322   : > { %v1263_v22 = vpop.xlane.xlu0 %1262 }
 0x323   : > { %v1267_v23 = vsub.f32 %v1259_v54, %v1263_v22 }
 0x324   : > { %v1266_v24 = vpop.xlane.xlu1 %1265 }
 0x325   : > { %v1269_v25 = vmul.f32 1.442695, %v1267_v23  ;;  %v1268_v26 = vsub.f32 %v1260_v58, %v1266_v24 }
 0x327   : > { %2396 = vpow2.f32 %v1269_v25  ;;  %v1271_v27 = vmul.f32 1.442695, %v1268_v26  ;;  %v2374_v26 = vld [vmem:[%s2811_s8] sm:$0xff]  }
 0x329   : > { %2398 = vpow2.f32 %v1271_v27  ;;  %v2375_v27 = vld [vmem:[%s2811_s8 + $0x8] sm:$0xff]  }
 0x331   : > { %v2397_v28 = vpop.eup %2396 }
 0x332   : > { %v1273_v29 = vsel %vm1087_vm6, %v2397_v28, 0.0 }
 0x333   : > { %v2399_v30 = vpop.eup %2398  ;;  %1274 = vadd.xlane.f32.xlu1 %v1273_v29  ;;  %v2377_v29 = vld [vmem:[%s2811_s8 + $0x18] sm:$0xff]  }
 0x334   : > { %v1276_v31 = vsel %vm1087_vm6, %v2399_v30, 0.0 }
 0x337   : > { %1277 = vadd.xlane.f32.xlu1 %v1276_v31 }
 0x348   : > { %1285 = vrot.lane.b32.xlu1 %v1086_v21, %s2529_s3  ;;  %s2532_s3 = smov 64  }
 0x34d   : > { %v1153_v32 = vpop.xlane.xlu1 %1152 }
 0x34e   : > { %2400 = vrcp.f32 %v1153_v32 }
 0x351   : > { %v1156_v33 = vpop.xlane.xlu1 %1155 }
 0x352   : > { %2402 = vrcp.f32 %v1156_v33 }
 0x358   : > { %v2401_v34 = vpop.eup %2400 }
 0x359   : > { %v1159_v36 = vmul.f32 %v2401_v34, %v2393_v10 }
 0x35c   : > { %v2403_v35 = vpop.eup %2402 }
 0x35d   : > { %v1160_v37 = vmul.f32 %v2403_v35, %v2395_v3 }
 0x35f   : > { %v1161_v38 = vpack.c.bf16 %v1160_v37, %v1159_v36  ;;  %v2126_v37 = vld [vmem:[%s3220_s29] ss:$0 sm:$0xff] }
 0x361   : > { %2224 = vmatmul.mubr.msk.bf16.vlgmr.msra.gmra.mrb[12].mxu0 %vm1087_vm6, %v1161_v38 }
 0x362   : > { %2235 = vmatprep.mubr.msk.bf16.mxu0 %vm2528_vm4, %v2527_v5 }
 0x3c0   : > { %v1275_v39 = vpop.xlane.xlu1 %1274 }
 0x3c1   : > { %2404 = vrcp.f32 %v1275_v39  ;;  %v2127_v39 = vld [vmem:[%s3222_s0] ss:$0 sm:$0xff] }
 0x3c4   : > { %v1278_v40 = vpop.xlane.xlu1 %1277 }
 0x3c5   : > { %2406 = vrcp.f32 %v1278_v40  ;;  %v2378_v40 = vld [vmem:[%s2811_s8 + $0x20] sm:$0xff]  }
 0x3c8   : > { %v1286_v41 = vpop.permute.xlu1 %1285 }
 0x3c9   : > { %2234 = vmatpush3.bf16.msra.mxu0 %v1286_v41 }
 0x3ca   : > { %2247 = vmatprep.subr.bf16.mxu0 %v2527_v5 }
 0x3cb   : > { %v2405_v42 = vpop.eup %2404 }
 0x3cc   : > { %v1281_v44 = vmul.f32 %v2405_v42, %v2397_v28  ;;  %v2376_v28 = vld [vmem:[%s2811_s8 + $0x10] sm:$0xff]  }
 0x3cf   : > { %v2407_v43 = vpop.eup %2406 }
 0x3d0   : > { %v1282_v45 = vmul.f32 %v2407_v43, %v2399_v30 }
 0x3d2   : > { %v1283_v46 = vpack.c.bf16 %v1282_v45, %v1281_v44  ;;  %v2379_v45 = vld [vmem:[%s2811_s8 + $0x28] sm:$0xff]   ;;  %s2531_s8 = smov 32  }
 0x3d4   : > { %2236 = vmatmul.mubr.msk.bf16.vlgmr.msra.gmra.mrb[16].mxu0 %vm1087_vm6, %v1283_v46 }
 0x3d5   : > { %2259 = vmatprep.mubr.msk.bf16.mxu0 %vm2528_vm4, %v2527_v5  ;;  %2248 = vmatpush3.bf16.msra.mxu0 %v2374_v26  ;;  %v2128_v26 = vld [vmem:[%s3224_s24] ss:$0 sm:$0xff] }
 0x3d6   : > { %2249 = vmatprep.subr.bf16.mxu0 %v2527_v5 }
 0x3d9   : > { %2250 = vmatpush3.bf16.msra.mxu0 %v2375_v27 }
 0x3da   : > { %2251 = vmatprep.subr.bf16.mxu0 %v2527_v5 }
 0x3dd   : > { %2252 = vmatpush3.bf16.msra.mxu0 %v2376_v28 }
 0x3de   : > { %2253 = vmatprep.subr.bf16.mxu0 %v2527_v5 }
 0x3e1   : > { %2254 = vmatpush3.bf16.msra.mxu0 %v2377_v29 }
 0x3e2   : > { %2255 = vmatprep.subr.bf16.mxu0 %v2527_v5 }
 0x3e5   : > { %2256 = vmatpush3.bf16.msra.mxu0 %v2378_v40 }
 0x3e6   : > { %2257 = vmatprep.subr.bf16.mxu0 %v2527_v5 }
 0x3e9   : > { %2258 = vmatpush3.bf16.msra.mxu0 %v2379_v45 }
 0x434   : > { %v1199_v48 = vpop.f32.mrb[12].mxu0 }
 0x435   : > { %v2225_v49 = vpop.f32.mrb[13].mxu0 }
 0x436   : > { %v1202_v50 = vpop.f32.mrb[14].mxu0 }
 0x437   : > { %v2226_v51 = vpop.f32.mrb[15].mxu0 }
 0x4a7   : > { %v1325_v53 = vpop.f32.mrb[16].mxu0 }
 0x4a8   : > { %v2237_v54 = vpop.f32.mrb[17].mxu0 }
 0x4a9   : > { %v1328_v55 = vpop.f32.mrb[18].mxu0 }
 0x4aa   : > { %v2346_v56 = vpack.i.bf16 %v1328_v55, %v1325_v53  ;;  %v2238_v57 = vpop.f32.mrb[19].mxu0 }
 0x4ac   : > { %2347 = vrot.lane.b32.xlu0 %v2346_v56, %s2530_s26 }
 0x51e   : > { %v2348_v58 = vpop.permute.xlu0 %2347 }
 0x51f   : > { %v2350_v59 = vunpack.i.h.bf16 %v2348_v58  ;;  %v2349_v60 = vunpack.i.l.bf16 %v2348_v58 }
 0x521   : > { %v1341_v61 = vsel %vm1087_vm6, %v1202_v50, %v2350_v59  ;;  %v1340_v62 = vsel %vm1087_vm6, %v1199_v48, %v2349_v60 }
 0x522   : > { %v1342_v63 = vpack.c.bf16 %v1341_v61, %v1340_v62 }
 0x524   : > { %2244 = vmatmul.mubr.msk.bf16.vlgmr.msra.gmra.mrb[8].mxu1 %vm911_vm5, %v1342_v63 }
 0x5f7   : > { %v1403_v8 = vpop.f32.mrb[8].mxu1 }
 0x5f8   : > { %v1404_v9 = vadd.f32 %v2122_v0, %v1403_v8  ;;  %v2245_v10 = vpop.f32.mrb[9].mxu1 }
 0x5f9   : > { %v1406_v11 = vpop.f32.mrb[10].mxu1 }
 0x5fa   : > { %v1407_v3 = vadd.f32 %v2122_v0, %v1406_v11  ;;  %v2246_v4 = vpop.f32.mrb[11].mxu1  ;;  %v1410_v12 = vadd.f32 %v1404_v9, %v2852_v18 }
 0x5fc   : > { %v1414_v13 = vsel %vm911_vm5, %v1410_v12, 0.0  ;;  %v1411_v14 = vadd.f32 %v1407_v3, %v2854_v19 }
 0x5fd   : > { %1415 = vadd.xlane.f32.xlu1 %v1414_v13  ;;  %v2380_v13 = vld [vmem:[%s2820_s12] sm:$0xff]  }
 0x5fe   : > { %v1417_v15 = vsel %vm911_vm5, %v1411_v14, 0.0 }
 0x5ff   : > { %1418 = vadd.xlane.f32.xlu0 %v1417_v15  ;;  %v2381_v15 = vld [vmem:[%s2820_s12 + $0x8] sm:$0xff]  }
 0x68a   : > { %v1416_v16 = vpop.xlane.xlu1 %1415 }
 0x68b   : > { %v1421_v17 = vmul.f32 0.03125, %v1416_v16  ;;  %v2382_v16 = vld [vmem:[%s2820_s12 + $0x10] sm:$0xff]  }
 0x68c   : > { %v1419_v20 = vpop.xlane.xlu0 %1418 }
 0x68d   : > { %v1423_v21 = vsub.f32 %v1410_v12, %v1421_v17  ;;  %v1422_v22 = vmul.f32 0.03125, %v1419_v20  ;;  %v2383_v17 = vld [vmem:[%s2820_s12 + $0x18] sm:$0xff]   ;;  %v2384_v20 = vld [vmem:[%s2820_s12 + $0x20] sm:$0xff]  }
 0x68f   : > { %v1424_v23 = vsub.f32 %v1411_v14, %v1422_v22  ;;  %v1425_v24 = vmul.f32 %v1423_v21, %v1423_v21  ;;  %v2533_v14 = vmov 0   ;;  %v2386_v22 = vld [vmem:[%s2820_s12 + $0x30] sm:$0xff]  }
 0x690   : > { %1739 = vmatprep.subr.bf16.mxu1 %v2533_v14 }
 0x691   : > { %v1427_v18 = vsel %vm911_vm5, %v1425_v24, 0.0  ;;  %v1426_v25 = vmul.f32 %v1424_v23, %v1424_v23  ;;  %1740 = vmatpush1.bf16.msra.mxu1 %v2380_v13  ;;  %v2388_v24 = vld [vmem:[%s2820_s12 + $0x40] sm:$0xff]  }
 0x692   : > { %1428 = vadd.xlane.f32.xlu1 %v1427_v18  ;;  %1741 = vmatprep.subr.bf16.mxu1 %v2533_v14  ;;  %v2389_v18 = vld [vmem:[%s2820_s12 + $0x48] sm:$0xff]  }
 0x693   : > { %v1430_v19 = vsel %vm911_vm5, %v1426_v25, 0.0  ;;  %v2390_v25 = vld [vmem:[%s2820_s12 + $0x50] sm:$0xff]  }
 0x695   : > { %1742 = vmatpush1.bf16.msra.mxu1 %v2381_v15 }
 0x696   : > { %1431 = vadd.xlane.f32.xlu1 %v1430_v19  ;;  %1743 = vmatprep.subr.bf16.mxu1 %v2533_v14  ;;  %v2391_v19 = vld [vmem:[%s2820_s12 + $0x58] sm:$0xff]  }
 0x699   : > { %1744 = vmatpush1.bf16.msra.mxu1 %v2382_v16 }
 0x69a   : > { %1745 = vmatprep.subr.bf16.mxu1 %v2533_v14 }
 0x69d   : > { %1746 = vmatpush1.bf16.msra.mxu1 %v2383_v17 }
 0x69e   : > { %1747 = vmatprep.subr.bf16.mxu1 %v2533_v14 }
 0x6a1   : > { %1748 = vmatpush1.bf16.msra.mxu1 %v2384_v20 }
 0x6a2   : > { %1749 = vmatprep.subr.bf16.mxu1 %v2533_v14 }
 0x71f   : > { %v1429_v30 = vpop.xlane.xlu1 %1428 }
 0x720   : > { %v1433_v31 = vmul.f32 0.03125, %v1429_v30 }
 0x722   : > { %v1435_v32 = vadd.f32 1e-05, %v1433_v31 }
 0x723   : > { %v1432_v33 = vpop.xlane.xlu1 %1431 }
 0x724   : > { %2408 = vrsqrt.f32 %v1435_v32  ;;  %v1434_v34 = vmul.f32 0.03125, %v1432_v33 }
 0x726   : > { %v1436_v35 = vadd.f32 1e-05, %v1434_v34 }
 0x728   : > { %2410 = vrsqrt.f32 %v1436_v35 }
 0x72e   : > { %v2409_v36 = vpop.eup %2408 }
 0x72f   : > { %v1439_v38 = vmul.f32 %v2409_v36, %v1423_v21  ;;  %v2385_v21 = vld [vmem:[%s2820_s12 + $0x28] sm:$0xff]  }
 0x730   : > { %1750 = vmatpush1.bf16.msra.mxu1 %v2385_v21  ;;  %v2150_v21 = vld [vmem:[%s849_s28] ss:$0 sm:$0xff]  ;;  %s3226_s28 = sld [smem:[#allocation12_spill]] }
 0x731   : > { %v1447_v41 = vmul.f32 %v2126_v37, %v1439_v38  ;;  %1751 = vmatprep.subr.bf16.mxu1 %v2533_v14 }
 0x732   : > { %v2411_v42 = vpop.eup %2410 }
 0x733   : > { %v1440_v43 = vmul.f32 %v2411_v42, %v1424_v23  ;;  %v1455_v44 = vadd.f32 %v2127_v39, %v1447_v41  ;;  %v2387_v23 = vld [vmem:[%s2820_s12 + $0x38] sm:$0xff]  }
 0x734   : > { %1752 = vmatpush1.bf16.msra.mxu1 %v2386_v22 }
 0x735   : > { %v1448_v46 = vmul.f32 %v2126_v37, %v1440_v43  ;;  %v2972_v48 = vmul.f32 %v2782_v6, %v1455_v44  ;;  %1753 = vmatprep.subr.bf16.mxu1 %v2533_v14 }
 0x736   : > { %p2152_p6 = scmp.ne.s32.totalorder %s3226_s28, 1 }
 0x737   : > { %v1456_v47 = vadd.f32 %v2127_v39, %v1448_v46  ;;  %v1485_v51 = vrot.slane %v2972_v48, 1  ;;  %v1472_v57 = vrot.slane %v2972_v48, 7 }
 0x738   : > { %1754 = vmatpush1.bf16.msra.mxu1 %v2387_v23 }
 0x739   : > { %v2975_v49 = vmul.f32 %v2788_v7, %v1456_v47  ;;  %1755 = vmatprep.subr.bf16.mxu1 %v2533_v14 }
 0x73b   : > { %v2351_v50 = vpack.i.bf16 %v2975_v49, %v2972_v48  ;;  %v1486_v52 = vrot.slane %v2975_v49, 1  ;;  %v1473_v56 = vrot.slane %v2975_v49, 7 }
 0x73c   : > { %1756 = vmatpush1.bf16.msra.mxu1 %v2388_v24  ;;  %v2151_v24 = vld [vmem:[%s852_s14] ss:$0 sm:$0xff] }
 0x73d   : > { %2352 = vrot.lane.b32.xlu1 %v2351_v50, %s2531_s8  ;;  %v1488_v5 = vsel %vm1487_vm7, %v1485_v51, %v1486_v52  ;;  %v1489_v53 = vsel %vm1487_vm7, %v1486_v52, %v1485_v51  ;;  %v1476_v61 = vsel %vm1474_vm9, %v1473_v56, %v1472_v57  ;;  %v1475_v63 = vsel %vm1474_vm9, %v1472_v57, %v1473_v56 }
 0x73e   : > { %v1497_v54 = vsel %vm1491_vm8, %v1489_v53, 0.0  ;;  %v1483_v0 = vsel %vm1477_vm10, %v1476_v61, 0.0  ;;  %1757 = vmatprep.subr.bf16.mxu1 %v2533_v14 }
 0x73f   : > { %v2356_v55 = vpack.i.bf16 %v1497_v54, %v1488_v5 }
 0x740   : > { %1758 = vmatpush1.bf16.msra.mxu1 %v2389_v18 }
 0x741   : > { %2357 = vrot.lane.b32.xlu0 %v2356_v55, %s2532_s3  ;;  %1759 = vmatprep.subr.bf16.mxu1 %v2533_v14 }
 0x744   : > { %1760 = vmatpush1.bf16.msra.mxu1 %v2390_v25 }
 0x745   : > { %1761 = vmatprep.subr.bf16.mxu1 %v2533_v14 }
 0x748   : > { %1762 = vmatpush1.bf16.msra.mxu1 %v2391_v19 }
 0x7af   : > { %v2353_v58 = vpop.permute.xlu1 %2352 }
 0x7b0   : > { %v2355_v59 = vunpack.i.h.bf16 %v2353_v58  ;;  %v2354_v60 = vunpack.i.l.bf16 %v2353_v58 }
 0x7b2   : > { %v1514_v10 = vsel %vm911_vm5, %v1483_v0, %v2354_v60  ;;  %v1515_v11 = vsel %vm911_vm5, %v1475_v63, %v2355_v59 }
 0x7b3   : > { %v2358_v62 = vpop.permute.xlu0 %2357 }
 0x7b4   : > { %v2360_v8 = vunpack.i.h.bf16 %v2358_v62  ;;  %v2359_v9 = vunpack.i.l.bf16 %v2358_v62 }
 0x7b6   : > { %v1517_v3 = vsel %vm1516_vm11, %v1514_v10, %v2359_v9  ;;  %v1518_v4 = vsel %vm1516_vm11, %v1515_v11, %v2360_v8 }
 0x7b7   : > { %v1519_v12 = vpack.c.bf16 %v1518_v4, %v1517_v3 }
 0x7b9   : > { %2260 = vmatmul.mubr.msk.bf16.vlgmr.msra.gmra.mrb[20].mxu0 %vm1562_vm12, %v1519_v12 }
 0x88c   : > { %v1600_v27 = vpop.f32.mrb[20].mxu0 }
 0x88d   : > { %v1601_v28 = vadd.f32 %v2128_v26, %v1600_v27  ;;  %v2261_v29 = vpop.f32.mrb[21].mxu0 }
 0x88e   : > { %v1603_v30 = vpop.f32.mrb[22].mxu0 }
 0x88f   : > { %v1607_v31 = vmax.f32 %v1601_v28, 0.0  ;;  %v1604_v32 = vadd.f32 %v2128_v26, %v1603_v30  ;;  %v2262_v33 = vpop.f32.mrb[23].mxu0 }
 0x891   : > { %v1608_v34 = vmax.f32 %v1604_v32, 0.0  ;;  %v1634_v35 = vrot.slane %v1607_v31, 7  ;;  %v1640_v36 = vrot.slane %v1607_v31, 1 }
 0x893   : > { %v1635_v37 = vrot.slane %v1608_v34, 7  ;;  %v1641_v38 = vrot.slane %v1608_v34, 1  ;;  %v2361_v39 = vpack.i.bf16 %v1608_v34, %v1607_v31 }
 0x895   : > { %2362 = vrot.lane.b32.xlu1 %v2361_v39, %s2532_s3  ;;  %v1642_v40 = vsel %vm1487_vm7, %v1640_v36, %v1641_v38  ;;  %v1643_v41 = vsel %vm1487_vm7, %v1641_v38, %v1640_v36  ;;  %v1636_v42 = vsel %vm1474_vm9, %v1634_v35, %v1635_v37  ;;  %v1637_v43 = vsel %vm1474_vm9, %v1635_v37, %v1634_v35 }
 0x896   : > { %v1645_v44 = vsel %vm1491_vm8, %v1643_v41, 0.0  ;;  %v1638_v51 = vsel %vm1477_vm10, %v1637_v43, 0.0 }
 0x897   : > { %v1657_v45 = vpack.c.bf16 %v1645_v44, %v1642_v40 }
 0x899   : > { %2149 = vmatprep.mubr.msk.bf16.mxu1 %vm1516_vm11, %v1657_v45 }
 0x907   : > { %v2363_v46 = vpop.permute.xlu1 %2362 }
 0x908   : > { %v2365_v47 = vunpack.i.h.bf16 %v2363_v46  ;;  %v2364_v50 = vunpack.i.l.bf16 %v2363_v46 }
 0x90a   : > { %v1654_v52 = vsel %vm1516_vm11, %v1638_v51, %v2364_v50  ;;  %v1655_v5 = vsel %vm1516_vm11, %v1636_v42, %v2365_v47 }
 0x90b   : > { %v1656_v53 = vpack.c.bf16 %v1655_v5, %v1654_v52 }
 0x90d   : > { %1772 = vmatmul.mubr.bf16.vlgmr.msra.gmra.mrb[12].mxu1 %v1656_v53 }
 0x9e0   : > { %v1773_v54 = vpop.f32.mrb[12].mxu1 }
 0x9e1   : > { %v1774_v55 = vadd.f32 %v2136_v2, %v1773_v54  ;;  %v1775_v56 = vpop.f32.mrb[13].mxu1 }
 0x9e2   : > { %v1776_v57 = vpop.f32.mrb[14].mxu1 }
 0x9e3   : > { %v1777_v58 = vadd.f32 %v2136_v2, %v1776_v57  ;;  %v1778_v59 = vpop.f32.mrb[15].mxu1  ;;  %v1780_v1 = vadd.f32 %v1774_v55, %v2972_v48 }
 0x9e5   : > { %v1784_v60 = vsel %vm911_vm5, %v1780_v1, 0.0  ;;  %v1781_v61 = vadd.f32 %v1777_v58, %v2975_v49 }
 0x9e6   : > { %1785 = vadd.xlane.f32.xlu1 %v1784_v60 }
 0x9e7   : > { %v1787_v62 = vsel %vm911_vm5, %v1781_v61, 0.0 }
 0x9e8   : > { %1788 = vadd.xlane.f32.xlu0 %v1787_v62 }
 0xa73   : > { %v1786_v63 = vpop.xlane.xlu1 %1785 }
 0xa74   : > { %v1790_v0 = vmul.f32 0.03125, %v1786_v63 }
 0xa75   : > { %v1789_v8 = vpop.xlane.xlu0 %1788 }
 0xa76   : > { %v1792_v9 = vsub.f32 %v1780_v1, %v1790_v0  ;;  %v1791_v10 = vmul.f32 0.03125, %v1789_v8 }
 0xa78   : > { %v1793_v11 = vsub.f32 %v1781_v61, %v1791_v10  ;;  %v1794_v3 = vmul.f32 %v1792_v9, %v1792_v9 }
 0xa7a   : > { %v1796_v4 = vsel %vm911_vm5, %v1794_v3, 0.0  ;;  %v1795_v12 = vmul.f32 %v1793_v11, %v1793_v11 }
 0xa7b   : > { %1797 = vadd.xlane.f32.xlu0 %v1796_v4 }
 0xa7c   : > { %v1799_v48 = vsel %vm911_vm5, %v1795_v12, 0.0 }
 0xa7d   : > { %1800 = vadd.xlane.f32.xlu1 %v1799_v48 }
 0xb08   : > { %v1798_v49 = vpop.xlane.xlu0 %1797 }
 0xb09   : > { %v1802_v13 = vmul.f32 0.03125, %v1798_v49 }
 0xb0a   : > { %v1801_v14 = vpop.xlane.xlu1 %1800 }
 0xb0b   : > { %v1804_v15 = vadd.f32 1e-05, %v1802_v13  ;;  %v1803_v16 = vmul.f32 0.03125, %v1801_v14 }
 0xb0d   : > { %2412 = vrsqrt.f32 %v1804_v15  ;;  %v1805_v17 = vadd.f32 1e-05, %v1803_v16 }
 0xb0f   : > { %2414 = vrsqrt.f32 %v1805_v17 }
 0xb17   : > { %v2413_v20 = vpop.eup %2412 }
 0xb18   : > { %v1808_v22 = vmul.f32 %v2413_v20, %v1792_v9 }
 0xb19   : > { %v2415_v23 = vpop.eup %2414 }
 0xb1a   : > { %v1816_v18 = vmul.f32 %v2150_v21, %v1808_v22  ;;  %v1809_v25 = vmul.f32 %v2415_v23, %v1793_v11 }
 0xb1c   : > { %v1824_v19 = vadd.f32 %v2151_v24, %v1816_v18  ;;  %v1817_v26 = vmul.f32 %v2150_v21, %v1809_v25  ;;  %1833 = sbr.rel (%p2152_p6) target bundleno = 2851 (0xb23), region = 100 }
 0xb1e   : > { %v1826_v27 = vmul.f32 %v2782_v6, %v1824_v19  ;;  %v1825_v28 = vadd.f32 %v2151_v24, %v1817_v26 }
 0xb20   : > { %1828 = vst.msk [vmem:[#allocation2] sm:$0xff] %vm911_vm5, %v1826_v27  ;;  %v1827_v29 = vmul.f32 %v2788_v7, %v1825_v28  ;;  %1834 = vst.msk [vmem:[%s2827_s5] sm:$0xff] (!%p2152_p6), %vm911_vm5, %v1826_v27 }
 0xb22   : > { %1829 = vst.msk [vmem:[#allocation2 + $0x8] sm:$0xff] %vm911_vm5, %v1827_v29  ;;  %1835 = vst.msk [vmem:[%s2827_s5 + $0x8] sm:$0xff] (!%p2152_p6), %vm911_vm5, %v1827_v29 }
 0xb23 PF: > { %s3227_s14 = sld [smem:[#allocation13_spill]]  ;;  %s3228_s1 = sld [smem:[#allocation10_spill]] }
 0xb24   : > { %s3230_s15 = sld [smem:[#allocation37_spill]]  ;;  %s1850_s13 = sshll.u32 %s2827_s5, 4  ;;  %s3074_s13 = int_to_ptr.vmem [resolvable:$true] %s1850_s13 }
 0xb25   : > { %s2428_s3 = scalar_lea.vmem %s3074_s13, 256  ;;  %s2534_s2 = smov [#allocation5]  }
 0xb26   : > { %p2429_p7 = scmp.ne.s32.totalorder %s3074_s13, %s2428_s3  ;;  %s2432_s22 = sshll.u32 %s2534_s2, 4  ;;  %s2433_s22 = int_to_ptr.vmem [resolvable:$false] %s2432_s22 }
 0xb27   : > { %s2434_s20 = scalar_lea.vmem %s2433_s22, 512  ;;  %p2435_p11 = scmp.lt.s32.totalorder %s3074_s13, %s2433_s22 }
 0xb28   : > { %p2430_p9 = pnand %p2429_p7, %p2689_p8  ;;  %p2436_p12 = scmp.lt.s32.totalorder %s2434_s20, %s2428_s3 }
 0xb29   : > { %s2163_s18 = sshll.u32 %s3227_s14, 8  ;;  %s3231_s0 = sand.u32 1, %s3228_s1  }
 0xb2a   : > { %s3071_s30 = scalar_lea.hbm %s3230_s15, %s2163_s18  ;;  %s3078_s8 = scalar_lea.sflag [#allocation6], %s3231_s0 }
 0xb2b   : > { %p2431_p10 = pneg %p2430_p9  ;;  %p2437_p13 = por %p2436_p12, %p2435_p11 }
 0xb2d   : > { %p2438_p1 = pnand %p2437_p13, %p2431_p10 }
 0xb2f   : > { %2441 = shalt.err (!%p2438_p1)
}
 0xb30   : > { %s2442_s5 = scalar_lea.hbm %s3071_s30, 256  ;;  %s2446_s19 = scalar_lea.hbm %s3230_s15, 512 }
 0xb31   : > { %p2443_p2 = scmp.ne.s32.totalorder %s3071_s30, %s2442_s5  ;;  %p2447_p5 = scmp.lt.u32.totalorder %s3071_s30, %s3230_s15 }
 0xb32   : > { %p2448_p6 = scmp.lt.u32.totalorder %s2446_s19, %s2442_s5  ;;  %p2450_p9 = scmp.lt.u32.totalorder %s2442_s5, %s3071_s30 }
 0xb33   : > { %p2444_p3 = pnand %p2443_p2, %p2689_p8 }
 0xb34   : > { %p2449_p7 = por %p2448_p6, %p2447_p5 }
 0xb35   : > { %p2445_p4 = pneg %p2444_p3 }
 0xb36   : > { %p2451_p10 = por %p2450_p9, %p2449_p7 }
 0xb38   : > { %p2452_p11 = pnand %p2451_p10, %p2445_p4 }
 0xb3a   : > { %2455 = shalt.err (!%p2452_p11)
}
 0xb3b   : > { %s2535_s25 = smov 128   ;;  %s2536_s9 = smov 8  }
 0xb3c   : > { %2265 = dma.vmem_to_hbm [thread:$0]  (%p2689_p8), %s3074_s13, 256, %s3071_s30, %s3078_s8, %s2535_s25, %s2535_s25, %s2536_s9  }
 0xb3d PF: > { %s3232_s10 = sld [smem:[#allocation16_spill]]  ;;  %s3233_s28 = sld [smem:[#allocation9_spill]] }
 0xb43   : > { %p2271_p12 = scmp.ge.s32.totalorder %s3232_s10, 2  ;;  %s1865_s1 = sand.u32 1, %s3233_s28  }
 0xb44   : > { %s1866_s18 = scalar_lea.sflag [#allocation6], %s1865_s1 }
 0xb45   : > { %p2268_p13 = pnand %p2271_p12, %p2699_p0 }
 0xb47   : > { %2491 = dma.done.wait (!%p2268_p13), %s1866_s18, 256  }
 0xb48   : > { %2493 = vsyncadd (!%p2268_p13), %s1866_s18, 4294967040  ;;  %s38_s13 = sadd.s32 1, %s3232_s10   ;;  %s3235_s22 = sld [smem:[#allocation10_spill]] }
 0xb49   : > { %p35_p1 = scmp.ge.s32.totalorder %s38_s13, 6   ;;  %s3236_s2 = sld [smem:[#allocation11_spill]] }
 0xb4a   : > { %s3237_s23 = sld [smem:[#allocation21_spill]]  ;;  %s3238_s24 = sld [smem:[#allocation14_spill]] }
 0xb4b   : > { %s3239_s25 = sld [smem:[#allocation15_spill]]  ;;  %s3240_s3 = sld [smem:[#allocation17_spill]] }
 0xb4c   : > { %s3241_s26 = sld [smem:[#allocation19_spill]]  ;;  %37 = sbr.rel (!%p35_p1) target bundleno = 32 (0x20), region = 183 }
 0xb53   :  { %1871 = vsyncpa [#allocation6], 1 }
 0xb54   :  { %1873 = vsyncpa [#allocation6 + $0x1], 1 }

</bundles_post_ra>
